<compile_context>
chip_gen: v7x
topology: tpu7x:2x2x1
jax: 0.10.0
libtpu: 0.0.40
codegen_flags: <defaults>
</compile_context>

<pallas_src>
import functools
import math

import jax
import jax.numpy as jnp
from jax.experimental import pallas as pl
from jax.experimental.pallas import tpu as pltpu


def _layernorm(x, gamma, beta, eps=1e-12):
    u = jnp.mean(x, axis=-1, keepdims=True)
    xc = x - u
    s = jnp.mean(xc * xc, axis=-1, keepdims=True)
    return gamma * (xc * jax.lax.rsqrt(s + eps)) + beta


def encoder_kernel(hs_ref, mask_ref,
                   wq_ref, bq_ref, wk_ref, bk_ref, wv_ref, bv_ref,
                   wao_ref, bao_ref, g1_ref, be1_ref,
                   wi_ref, bi_ref, wo_ref, bo_ref, g2_ref, be2_ref,
                   out_ref, *, num_heads, head_dim):
    BT, S, D = hs_ref.shape
    R = BT * S

    x3 = hs_ref[...].astype(jnp.float32)        # (BT, S, D)  residual kept in f32
    x2 = x3.reshape(R, D)                       # fold batch into rows for the dense layers
    x2_bf = x2.astype(jnp.bfloat16)             # bf16 matmul operand
    mask = mask_ref[...].astype(jnp.float32)    # (BT, 1, S) additive mask

    scale = 1.0 / math.sqrt(head_dim)

    # --- SelfAttention + SelfOutput dense, accumulated per head (lane-dense f32 acc) ---
    attn_acc = jnp.zeros((R, D), jnp.float32)
    for h in range(num_heads):
        # Per-head projections from head-sliced weight refs (static leading-index loads).
        qh = (jnp.dot(x2_bf, wq_ref[h], preferred_element_type=jnp.float32)
              + bq_ref[h]) * scale                                        # (R, dh) f32
        kh = jnp.dot(x2_bf, wk_ref[h], preferred_element_type=jnp.float32) + bk_ref[h]
        vh = jnp.dot(x2_bf, wv_ref[h], preferred_element_type=jnp.float32) + bv_ref[h]

        q3 = qh.reshape(BT, S, head_dim).astype(jnp.bfloat16)
        k3 = kh.reshape(BT, S, head_dim).astype(jnp.bfloat16)
        v3 = vh.reshape(BT, S, head_dim).astype(jnp.bfloat16)

        scores = jnp.einsum('bqd,bkd->bqk', q3, k3,
                            preferred_element_type=jnp.float32) + mask     # (BT, S, S) f32
        m = jnp.max(scores, axis=-1, keepdims=True)
        e = jnp.exp(scores - m)
        probs = e * pl.reciprocal(jnp.sum(e, axis=-1, keepdims=True), approx=True)
        # TODO(synk): attention-prob dropout is identity (eval mode) and the torch debug
        # print of attention_probs[0,0,0,:30] is intentionally omitted.
        ctx = jnp.einsum('bqk,bkd->bqd', probs.astype(jnp.bfloat16), v3,
                         preferred_element_type=jnp.float32)               # (BT, S, dh)

        # Fold head-merge + attention-output dense:  ctx @ Wao == sum_h ctx_h @ Wao[h]
        attn_acc = attn_acc + jnp.dot(
            ctx.reshape(R, head_dim).astype(jnp.bfloat16), wao_ref[h],
            preferred_element_type=jnp.float32)

    # --- SelfOutput: bias + residual + LayerNorm (f32) ---
    h1 = attn_acc + bao_ref[...]
    att_out = _layernorm(h1 + x2, g1_ref[...], be1_ref[...])

    # --- Intermediate: dense + ReLU ---
    inter = jnp.maximum(
        jnp.dot(att_out.astype(jnp.bfloat16), wi_ref[...],
                preferred_element_type=jnp.float32) + bi_ref[...], 0.0)

    # --- Output: dense + residual + LayerNorm ---
    h2 = jnp.dot(inter.astype(jnp.bfloat16), wo_ref[...],
                 preferred_element_type=jnp.float32) + bo_ref[...]
    out = _layernorm(h2 + att_out, g2_ref[...], be2_ref[...])

    out_ref[...] = out.reshape(BT, S, D).astype(out_ref.dtype)


def encoder_forward(hidden_states, attention_mask, params, num_heads, batch_tile=None):
    B, S, D = hidden_states.shape
    I = params['wi'].shape[1]
    dh = D // num_heads
    assert num_heads * dh == D
    if batch_tile is None:
        batch_tile = B          # toy sizes: whole batch in a single grid step
    assert B % batch_tile == 0

    bf16 = jnp.bfloat16
    # Head-leading packing of Q/K/V weights/biases, per-head row blocks of Wao; bf16 weights.
    wq_h = params['wq'].reshape(D, num_heads, dh).transpose(1, 0, 2).astype(bf16)
    wk_h = params['wk'].reshape(D, num_heads, dh).transpose(1, 0, 2).astype(bf16)
    wv_h = params['wv'].reshape(D, num_heads, dh).transpose(1, 0, 2).astype(bf16)
    bq_h = params['bq'].reshape(1, num_heads, dh).transpose(1, 0, 2)
    bk_h = params['bk'].reshape(1, num_heads, dh).transpose(1, 0, 2)
    bv_h = params['bv'].reshape(1, num_heads, dh).transpose(1, 0, 2)
    wao_h = params['wao'].reshape(num_heads, dh, D).astype(bf16)
    wi_b = params['wi'].astype(bf16)
    wo_b = params['wo'].astype(bf16)

    mask3 = attention_mask.reshape(B, 1, S)

    def const(shape):
        return pl.BlockSpec(shape, lambda b: (0,) * len(shape))

    kernel = functools.partial(encoder_kernel, num_heads=num_heads, head_dim=dh)

    in_specs = [
        pl.BlockSpec((batch_tile, S, D), lambda b: (b, 0, 0)),   # hidden_states
        pl.BlockSpec((batch_tile, 1, S), lambda b: (b, 0, 0)),   # attention_mask
        const((num_heads, D, dh)), const((num_heads, 1, dh)),    # query  W/b per head
        const((num_heads, D, dh)), const((num_heads, 1, dh)),    # key    W/b per head
        const((num_heads, D, dh)), const((num_heads, 1, dh)),    # value  W/b per head
        const((num_heads, dh, D)), const((1, D)),                # attention output dense
        const((1, D)), const((1, D)),                            # LayerNorm 1 gamma/beta
        const((D, I)), const((1, I)),                            # intermediate dense
        const((I, D)), const((1, D)),                            # output dense
        const((1, D)), const((1, D)),                            # LayerNorm 2 gamma/beta
    ]

    return pl.pallas_call(
        kernel,
        grid=(B // batch_tile,),
        in_specs=in_specs,
        out_specs=pl.BlockSpec((batch_tile, S, D), lambda b: (b, 0, 0)),
        out_shape=jax.ShapeDtypeStruct((B, S, D), jnp.float32),
        compiler_params=pltpu.CompilerParams(
            dimension_semantics=("parallel",),
            vmem_limit_bytes=32 * 1024 * 1024),
    )(hidden_states, mask3,
      wq_h, bq_h, wk_h, bk_h, wv_h, bv_h,
      wao_h, params['bao'], params['g1'], params['be1'],
      wi_b, params['bi'], wo_b, params['bo'], params['g2'], params['be2'])


def encoder_reference(hidden_states, attention_mask, params, num_heads):
    """Pure-JAX fp32 reference mirroring the PyTorch forward (eval mode)."""
    B, S, D = hidden_states.shape
    dh = D // num_heads

    def lin(x, w, b):
        return x @ w + b[0]

    def split_heads(x):
        return x.reshape(B, S, num_heads, dh).transpose(0, 2, 1, 3)

    q = split_heads(lin(hidden_states, params['wq'], params['bq']))
    k = split_heads(lin(hidden_states, params['wk'], params['bk']))
    v = split_heads(lin(hidden_states, params['wv'], params['bv']))
    scores = jnp.einsum('bhqd,bhkd->bhqk', q, k) / math.sqrt(dh)
    scores = scores + attention_mask[:, None, None, :]
    probs = jax.nn.softmax(scores, axis=-1)
    ctx = jnp.einsum('bhqk,bhkd->bhqd', probs, v)
    ctx = ctx.transpose(0, 2, 1, 3).reshape(B, S, D)

    def ln(x, g, b):
        u = jnp.mean(x, axis=-1, keepdims=True)
        s = jnp.mean((x - u) ** 2, axis=-1, keepdims=True)
        return g[0] * ((x - u) / jnp.sqrt(s + 1e-12)) + b[0]

    att_out = ln(lin(ctx, params['wao'], params['bao']) + hidden_states,
                 params['g1'], params['be1'])
    inter = jax.nn.relu(lin(att_out, params['wi'], params['bi']))
    out = ln(lin(inter, params['wo'], params['bo']) + att_out,
             params['g2'], params['be2'])
    return out


if __name__ == "__main__":
    B, S, D, H, I = 2, 8, 32, 4, 64

    key = jax.random.PRNGKey(0)
    ks = jax.random.split(key, 16)

    def w(k, shape):
        return (0.02 * jax.random.normal(k, shape)).astype(jnp.float32)

    params = dict(
        wq=w(ks[0], (D, D)), bq=w(ks[1], (1, D)),
        wk=w(ks[2], (D, D)), bk=w(ks[3], (1, D)),
        wv=w(ks[4], (D, D)), bv=w(ks[5], (1, D)),
        wao=w(ks[6], (D, D)), bao=w(ks[7], (1, D)),
        g1=jnp.ones((1, D), jnp.float32), be1=jnp.zeros((1, D), jnp.float32),
        wi=w(ks[8], (D, I)), bi=w(ks[9], (1, I)),
        wo=w(ks[10], (I, D)), bo=w(ks[11], (1, D)),
        g2=jnp.ones((1, D), jnp.float32), be2=jnp.zeros((1, D), jnp.float32),
    )

    hidden_states = jax.random.normal(ks[12], (B, S, D), dtype=jnp.float32)
    # Additive mask: 0 for visible, -10000 for masked positions (BERT convention).
    mask_bits = jax.random.bernoulli(ks[13], 0.8, (B, S))
    attention_mask = jnp.where(mask_bits, 0.0, -10000.0).astype(jnp.float32)

    out = encoder_forward(hidden_states, attention_mask, params, num_heads=H)
    out = jax.block_until_ready(out)

    ref = encoder_reference(hidden_states, attention_mask, params, num_heads=H)
    assert out.shape == (B, S, D)
    # bf16 matmul operands + approx softmax reciprocal -> compare with a looser tolerance.
    max_err = jnp.max(jnp.abs(out - ref))
    assert jnp.allclose(out, ref, atol=2e-2, rtol=2e-2), f"max abs err {max_err}"

    print("KERNEL_OK")
</pallas_src>

<mosaic_0001>
module attributes {stable_mosaic.version = 11 : i64} {
  func.func @encoder_kernel(%arg0: i32, %arg1: memref<2x8x32xf32, #tpu.memory_space<vmem>>, %arg2: memref<2x1x8xf32, #tpu.memory_space<vmem>>, %arg3: memref<4x32x8xbf16, #tpu.memory_space<vmem>>, %arg4: memref<4x1x8xf32, #tpu.memory_space<vmem>>, %arg5: memref<4x32x8xbf16, #tpu.memory_space<vmem>>, %arg6: memref<4x1x8xf32, #tpu.memory_space<vmem>>, %arg7: memref<4x32x8xbf16, #tpu.memory_space<vmem>>, %arg8: memref<4x1x8xf32, #tpu.memory_space<vmem>>, %arg9: memref<4x8x32xbf16, #tpu.memory_space<vmem>>, %arg10: memref<1x32xf32, #tpu.memory_space<vmem>>, %arg11: memref<1x32xf32, #tpu.memory_space<vmem>>, %arg12: memref<1x32xf32, #tpu.memory_space<vmem>>, %arg13: memref<32x64xbf16, #tpu.memory_space<vmem>>, %arg14: memref<1x64xf32, #tpu.memory_space<vmem>>, %arg15: memref<64x32xbf16, #tpu.memory_space<vmem>>, %arg16: memref<1x32xf32, #tpu.memory_space<vmem>>, %arg17: memref<1x32xf32, #tpu.memory_space<vmem>>, %arg18: memref<1x32xf32, #tpu.memory_space<vmem>>, %arg19: memref<2x8x32xf32, #tpu.memory_space<vmem>>) attributes {dimension_semantics = [#tpu.dimension_semantics<parallel>], iteration_bounds = array<i64: 1>, scalar_prefetch = 0 : i64, scratch_operands = 0 : i64, tpu.core_type = #tpu.core_type<tc>, window_params = [{transform_indices = @transform_0, window_bounds = array<i64: 2, 8, 32>}, {transform_indices = @transform_1, window_bounds = array<i64: 2, 1, 8>}, {pipeline_mode = #tpu.pipeline_mode<synchronous>, transform_indices = @transform_2, window_bounds = array<i64: 4, 32, 8>}, {pipeline_mode = #tpu.pipeline_mode<synchronous>, transform_indices = @transform_3, window_bounds = array<i64: 4, 1, 8>}, {pipeline_mode = #tpu.pipeline_mode<synchronous>, transform_indices = @transform_4, window_bounds = array<i64: 4, 32, 8>}, {pipeline_mode = #tpu.pipeline_mode<synchronous>, transform_indices = @transform_5, window_bounds = array<i64: 4, 1, 8>}, {pipeline_mode = #tpu.pipeline_mode<synchronous>, transform_indices = @transform_6, window_bounds = array<i64: 4, 32, 8>}, {pipeline_mode = #tpu.pipeline_mode<synchronous>, transform_indices = @transform_7, window_bounds = array<i64: 4, 1, 8>}, {pipeline_mode = #tpu.pipeline_mode<synchronous>, transform_indices = @transform_8, window_bounds = array<i64: 4, 8, 32>}, {pipeline_mode = #tpu.pipeline_mode<synchronous>, transform_indices = @transform_9, window_bounds = array<i64: 1, 32>}, {pipeline_mode = #tpu.pipeline_mode<synchronous>, transform_indices = @transform_10, window_bounds = array<i64: 1, 32>}, {pipeline_mode = #tpu.pipeline_mode<synchronous>, transform_indices = @transform_11, window_bounds = array<i64: 1, 32>}, {pipeline_mode = #tpu.pipeline_mode<synchronous>, transform_indices = @transform_12, window_bounds = array<i64: 32, 64>}, {pipeline_mode = #tpu.pipeline_mode<synchronous>, transform_indices = @transform_13, window_bounds = array<i64: 1, 64>}, {pipeline_mode = #tpu.pipeline_mode<synchronous>, transform_indices = @transform_14, window_bounds = array<i64: 64, 32>}, {pipeline_mode = #tpu.pipeline_mode<synchronous>, transform_indices = @transform_15, window_bounds = array<i64: 1, 32>}, {pipeline_mode = #tpu.pipeline_mode<synchronous>, transform_indices = @transform_16, window_bounds = array<i64: 1, 32>}, {pipeline_mode = #tpu.pipeline_mode<synchronous>, transform_indices = @transform_17, window_bounds = array<i64: 1, 32>}, {transform_indices = @transform_18, window_bounds = array<i64: 2, 8, 32>}]} {
    %c0 = arith.constant 0 : index
    %c0_0 = arith.constant 0 : index
    %c0_1 = arith.constant 0 : index
    %0 = vector.load %arg1[%c0, %c0_0, %c0_1] : memref<2x8x32xf32, #tpu.memory_space<vmem>>, vector<2x8x32xf32>
    %1 = vector.shape_cast %0 : vector<2x8x32xf32> to vector<16x32xf32>
    %2 = arith.truncf %1 : vector<16x32xf32> to vector<16x32xbf16>
    %c0_2 = arith.constant 0 : index
    %c0_3 = arith.constant 0 : index
    %c0_4 = arith.constant 0 : index
    %3 = vector.load %arg2[%c0_2, %c0_3, %c0_4] : memref<2x1x8xf32, #tpu.memory_space<vmem>>, vector<2x1x8xf32>
    %cst = arith.constant 0.000000e+00 : f32
    %4 = vector.broadcast %cst : f32 to vector<16x32xf32>
    %c0_5 = arith.constant 0 : index
    %c0_6 = arith.constant 0 : index
    %c0_7 = arith.constant 0 : index
    %5 = vector.load %arg3[%c0_5, %c0_6, %c0_7] : memref<4x32x8xbf16, #tpu.memory_space<vmem>>, vector<1x32x8xbf16>
    %6 = vector.shape_cast %5 : vector<1x32x8xbf16> to vector<32x8xbf16>
    %cst_8 = arith.constant dense<0.000000e+00> : vector<16x8xf32>
    %7 = tpu.matmul %2, %6, %cst_8 {dimension_numbers = #tpu.dot_dimension_numbers<[1], [0], [0], [1], [0, 0, 1, 1], [], []>} : vector<16x32xbf16>, vector<32x8xbf16>, vector<16x8xf32> -> vector<16x8xf32>
    %c0_9 = arith.constant 0 : index
    %c0_10 = arith.constant 0 : index
    %c0_11 = arith.constant 0 : index
    %8 = vector.load %arg4[%c0_9, %c0_10, %c0_11] : memref<4x1x8xf32, #tpu.memory_space<vmem>>, vector<1x1x8xf32>
    %9 = vector.shape_cast %8 : vector<1x1x8xf32> to vector<1x8xf32>
    %10 = vector.broadcast %9 : vector<1x8xf32> to vector<16x8xf32>
    %11 = arith.addf %7, %10 : vector<16x8xf32>
    %cst_12 = arith.constant 0.353553385 : f32
    %12 = vector.broadcast %cst_12 : f32 to vector<16x8xf32>
    %13 = arith.mulf %11, %12 : vector<16x8xf32>
    %c0_13 = arith.constant 0 : index
    %c0_14 = arith.constant 0 : index
    %c0_15 = arith.constant 0 : index
    %14 = vector.load %arg5[%c0_13, %c0_14, %c0_15] : memref<4x32x8xbf16, #tpu.memory_space<vmem>>, vector<1x32x8xbf16>
    %15 = vector.shape_cast %14 : vector<1x32x8xbf16> to vector<32x8xbf16>
    %cst_16 = arith.constant dense<0.000000e+00> : vector<16x8xf32>
    %16 = tpu.matmul %2, %15, %cst_16 {dimension_numbers = #tpu.dot_dimension_numbers<[1], [0], [0], [1], [0, 0, 1, 1], [], []>} : vector<16x32xbf16>, vector<32x8xbf16>, vector<16x8xf32> -> vector<16x8xf32>
    %c0_17 = arith.constant 0 : index
    %c0_18 = arith.constant 0 : index
    %c0_19 = arith.constant 0 : index
    %17 = vector.load %arg6[%c0_17, %c0_18, %c0_19] : memref<4x1x8xf32, #tpu.memory_space<vmem>>, vector<1x1x8xf32>
    %18 = vector.shape_cast %17 : vector<1x1x8xf32> to vector<1x8xf32>
    %19 = vector.broadcast %18 : vector<1x8xf32> to vector<16x8xf32>
    %20 = arith.addf %16, %19 : vector<16x8xf32>
    %c0_20 = arith.constant 0 : index
    %c0_21 = arith.constant 0 : index
    %c0_22 = arith.constant 0 : index
    %21 = vector.load %arg7[%c0_20, %c0_21, %c0_22] : memref<4x32x8xbf16, #tpu.memory_space<vmem>>, vector<1x32x8xbf16>
    %22 = vector.shape_cast %21 : vector<1x32x8xbf16> to vector<32x8xbf16>
    %cst_23 = arith.constant dense<0.000000e+00> : vector<16x8xf32>
    %23 = tpu.matmul %2, %22, %cst_23 {dimension_numbers = #tpu.dot_dimension_numbers<[1], [0], [0], [1], [0, 0, 1, 1], [], []>} : vector<16x32xbf16>, vector<32x8xbf16>, vector<16x8xf32> -> vector<16x8xf32>
    %c0_24 = arith.constant 0 : index
    %c0_25 = arith.constant 0 : index
    %c0_26 = arith.constant 0 : index
    %24 = vector.load %arg8[%c0_24, %c0_25, %c0_26] : memref<4x1x8xf32, #tpu.memory_space<vmem>>, vector<1x1x8xf32>
    %25 = vector.shape_cast %24 : vector<1x1x8xf32> to vector<1x8xf32>
    %26 = vector.broadcast %25 : vector<1x8xf32> to vector<16x8xf32>
    %27 = arith.addf %23, %26 : vector<16x8xf32>
    %28 = vector.shape_cast %13 : vector<16x8xf32> to vector<2x8x8xf32>
    %29 = arith.truncf %28 : vector<2x8x8xf32> to vector<2x8x8xbf16>
    %30 = vector.shape_cast %20 : vector<16x8xf32> to vector<2x8x8xf32>
    %31 = arith.truncf %30 : vector<2x8x8xf32> to vector<2x8x8xbf16>
    %32 = vector.shape_cast %27 : vector<16x8xf32> to vector<2x8x8xf32>
    %33 = arith.truncf %32 : vector<2x8x8xf32> to vector<2x8x8xbf16>
    "tpu.trace_start"() <{level = 10 : i32, message = "bqd,bkd->bqk"}> : () -> ()
    %cst_27 = arith.constant dense<0.000000e+00> : vector<2x8x8xf32>
    %34 = tpu.matmul %29, %31, %cst_27 {dimension_numbers = #tpu.dot_dimension_numbers<[2], [2], [1], [1], [0, 0, 0, 1, 1, 1], [0], [0]>} : vector<2x8x8xbf16>, vector<2x8x8xbf16>, vector<2x8x8xf32> -> vector<2x8x8xf32>
    "tpu.trace_stop"() : () -> ()
    %35 = vector.broadcast %3 : vector<2x1x8xf32> to vector<2x8x8xf32>
    %36 = arith.addf %34, %35 : vector<2x8x8xf32>
    %cst_28 = arith.constant dense<0xFF800000> : vector<2x8xf32>
    %37 = vector.multi_reduction <maximumf>, %36, %cst_28 [2] : vector<2x8x8xf32> to vector<2x8xf32>
    %38 = vector.shape_cast %37 : vector<2x8xf32> to vector<2x8x1xf32>
    %39 = vector.broadcast %38 : vector<2x8x1xf32> to vector<2x8x8xf32>
    %40 = arith.subf %36, %39 : vector<2x8x8xf32>
    %41 = math.exp %40 : vector<2x8x8xf32>
    %cst_29 = arith.constant dense<0.000000e+00> : vector<2x8xf32>
    %42 = vector.multi_reduction <add>, %41, %cst_29 [2] : vector<2x8x8xf32> to vector<2x8xf32>
    %43 = vector.shape_cast %42 : vector<2x8xf32> to vector<2x8x1xf32>
    %44 = tpu.reciprocal %43 {approx = true} : vector<2x8x1xf32> -> vector<2x8x1xf32>
    %45 = vector.broadcast %44 : vector<2x8x1xf32> to vector<2x8x8xf32>
    %46 = arith.mulf %41, %45 : vector<2x8x8xf32>
    %47 = arith.truncf %46 : vector<2x8x8xf32> to vector<2x8x8xbf16>
    "tpu.trace_start"() <{level = 10 : i32, message = "bqk,bkd->bqd"}> : () -> ()
    %cst_30 = arith.constant dense<0.000000e+00> : vector<2x8x8xf32>
    %48 = tpu.matmul %47, %33, %cst_30 {dimension_numbers = #tpu.dot_dimension_numbers<[2], [1], [1], [2], [0, 0, 0, 1, 1, 2], [0], [0]>} : vector<2x8x8xbf16>, vector<2x8x8xbf16>, vector<2x8x8xf32> -> vector<2x8x8xf32>
    "tpu.trace_stop"() : () -> ()
    %49 = vector.shape_cast %48 : vector<2x8x8xf32> to vector<16x8xf32>
    %50 = arith.truncf %49 : vector<16x8xf32> to vector<16x8xbf16>
    %c0_31 = arith.constant 0 : index
    %c0_32 = arith.constant 0 : index
    %c0_33 = arith.constant 0 : index
    %51 = vector.load %arg9[%c0_31, %c0_32, %c0_33] : memref<4x8x32xbf16, #tpu.memory_space<vmem>>, vector<1x8x32xbf16>
    %52 = vector.shape_cast %51 : vector<1x8x32xbf16> to vector<8x32xbf16>
    %cst_34 = arith.constant dense<0.000000e+00> : vector<16x32xf32>
    %53 = tpu.matmul %50, %52, %cst_34 {dimension_numbers = #tpu.dot_dimension_numbers<[1], [0], [0], [1], [0, 0, 1, 1], [], []>} : vector<16x8xbf16>, vector<8x32xbf16>, vector<16x32xf32> -> vector<16x32xf32>
    %54 = arith.addf %4, %53 : vector<16x32xf32>
    %c1 = arith.constant 1 : index
    %c0_35 = arith.constant 0 : index
    %c0_36 = arith.constant 0 : index
    %55 = vector.load %arg3[%c1, %c0_35, %c0_36] : memref<4x32x8xbf16, #tpu.memory_space<vmem>>, vector<1x32x8xbf16>
    %56 = vector.shape_cast %55 : vector<1x32x8xbf16> to vector<32x8xbf16>
    %cst_37 = arith.constant dense<0.000000e+00> : vector<16x8xf32>
    %57 = tpu.matmul %2, %56, %cst_37 {dimension_numbers = #tpu.dot_dimension_numbers<[1], [0], [0], [1], [0, 0, 1, 1], [], []>} : vector<16x32xbf16>, vector<32x8xbf16>, vector<16x8xf32> -> vector<16x8xf32>
    %c1_38 = arith.constant 1 : index
    %c0_39 = arith.constant 0 : index
    %c0_40 = arith.constant 0 : index
    %58 = vector.load %arg4[%c1_38, %c0_39, %c0_40] : memref<4x1x8xf32, #tpu.memory_space<vmem>>, vector<1x1x8xf32>
    %59 = vector.shape_cast %58 : vector<1x1x8xf32> to vector<1x8xf32>
    %60 = vector.broadcast %59 : vector<1x8xf32> to vector<16x8xf32>
    %61 = arith.addf %57, %60 : vector<16x8xf32>
    %cst_41 = arith.constant 0.353553385 : f32
    %62 = vector.broadcast %cst_41 : f32 to vector<16x8xf32>
    %63 = arith.mulf %61, %62 : vector<16x8xf32>
    %c1_42 = arith.constant 1 : index
    %c0_43 = arith.constant 0 : index
    %c0_44 = arith.constant 0 : index
    %64 = vector.load %arg5[%c1_42, %c0_43, %c0_44] : memref<4x32x8xbf16, #tpu.memory_space<vmem>>, vector<1x32x8xbf16>
    %65 = vector.shape_cast %64 : vector<1x32x8xbf16> to vector<32x8xbf16>
    %cst_45 = arith.constant dense<0.000000e+00> : vector<16x8xf32>
    %66 = tpu.matmul %2, %65, %cst_45 {dimension_numbers = #tpu.dot_dimension_numbers<[1], [0], [0], [1], [0, 0, 1, 1], [], []>} : vector<16x32xbf16>, vector<32x8xbf16>, vector<16x8xf32> -> vector<16x8xf32>
    %c1_46 = arith.constant 1 : index
    %c0_47 = arith.constant 0 : index
    %c0_48 = arith.constant 0 : index
    %67 = vector.load %arg6[%c1_46, %c0_47, %c0_48] : memref<4x1x8xf32, #tpu.memory_space<vmem>>, vector<1x1x8xf32>
    %68 = vector.shape_cast %67 : vector<1x1x8xf32> to vector<1x8xf32>
    %69 = vector.broadcast %68 : vector<1x8xf32> to vector<16x8xf32>
    %70 = arith.addf %66, %69 : vector<16x8xf32>
    %c1_49 = arith.constant 1 : index
    %c0_50 = arith.constant 0 : index
    %c0_51 = arith.constant 0 : index
    %71 = vector.load %arg7[%c1_49, %c0_50, %c0_51] : memref<4x32x8xbf16, #tpu.memory_space<vmem>>, vector<1x32x8xbf16>
    %72 = vector.shape_cast %71 : vector<1x32x8xbf16> to vector<32x8xbf16>
    %cst_52 = arith.constant dense<0.000000e+00> : vector<16x8xf32>
    %73 = tpu.matmul %2, %72, %cst_52 {dimension_numbers = #tpu.dot_dimension_numbers<[1], [0], [0], [1], [0, 0, 1, 1], [], []>} : vector<16x32xbf16>, vector<32x8xbf16>, vector<16x8xf32> -> vector<16x8xf32>
    %c1_53 = arith.constant 1 : index
    %c0_54 = arith.constant 0 : index
    %c0_55 = arith.constant 0 : index
    %74 = vector.load %arg8[%c1_53, %c0_54, %c0_55] : memref<4x1x8xf32, #tpu.memory_space<vmem>>, vector<1x1x8xf32>
    %75 = vector.shape_cast %74 : vector<1x1x8xf32> to vector<1x8xf32>
    %76 = vector.broadcast %75 : vector<1x8xf32> to vector<16x8xf32>
    %77 = arith.addf %73, %76 : vector<16x8xf32>
    %78 = vector.shape_cast %63 : vector<16x8xf32> to vector<2x8x8xf32>
    %79 = arith.truncf %78 : vector<2x8x8xf32> to vector<2x8x8xbf16>
    %80 = vector.shape_cast %70 : vector<16x8xf32> to vector<2x8x8xf32>
    %81 = arith.truncf %80 : vector<2x8x8xf32> to vector<2x8x8xbf16>
    %82 = vector.shape_cast %77 : vector<16x8xf32> to vector<2x8x8xf32>
    %83 = arith.truncf %82 : vector<2x8x8xf32> to vector<2x8x8xbf16>
    "tpu.trace_start"() <{level = 10 : i32, message = "bqd,bkd->bqk"}> : () -> ()
    %cst_56 = arith.constant dense<0.000000e+00> : vector<2x8x8xf32>
    %84 = tpu.matmul %79, %81, %cst_56 {dimension_numbers = #tpu.dot_dimension_numbers<[2], [2], [1], [1], [0, 0, 0, 1, 1, 1], [0], [0]>} : vector<2x8x8xbf16>, vector<2x8x8xbf16>, vector<2x8x8xf32> -> vector<2x8x8xf32>
    "tpu.trace_stop"() : () -> ()
    %85 = vector.broadcast %3 : vector<2x1x8xf32> to vector<2x8x8xf32>
    %86 = arith.addf %84, %85 : vector<2x8x8xf32>
    %cst_57 = arith.constant dense<0xFF800000> : vector<2x8xf32>
    %87 = vector.multi_reduction <maximumf>, %86, %cst_57 [2] : vector<2x8x8xf32> to vector<2x8xf32>
    %88 = vector.shape_cast %87 : vector<2x8xf32> to vector<2x8x1xf32>
    %89 = vector.broadcast %88 : vector<2x8x1xf32> to vector<2x8x8xf32>
    %90 = arith.subf %86, %89 : vector<2x8x8xf32>
    %91 = math.exp %90 : vector<2x8x8xf32>
    %cst_58 = arith.constant dense<0.000000e+00> : vector<2x8xf32>
    %92 = vector.multi_reduction <add>, %91, %cst_58 [2] : vector<2x8x8xf32> to vector<2x8xf32>
    %93 = vector.shape_cast %92 : vector<2x8xf32> to vector<2x8x1xf32>
    %94 = tpu.reciprocal %93 {approx = true} : vector<2x8x1xf32> -> vector<2x8x1xf32>
    %95 = vector.broadcast %94 : vector<2x8x1xf32> to vector<2x8x8xf32>
    %96 = arith.mulf %91, %95 : vector<2x8x8xf32>
    %97 = arith.truncf %96 : vector<2x8x8xf32> to vector<2x8x8xbf16>
    "tpu.trace_start"() <{level = 10 : i32, message = "bqk,bkd->bqd"}> : () -> ()
    %cst_59 = arith.constant dense<0.000000e+00> : vector<2x8x8xf32>
    %98 = tpu.matmul %97, %83, %cst_59 {dimension_numbers = #tpu.dot_dimension_numbers<[2], [1], [1], [2], [0, 0, 0, 1, 1, 2], [0], [0]>} : vector<2x8x8xbf16>, vector<2x8x8xbf16>, vector<2x8x8xf32> -> vector<2x8x8xf32>
    "tpu.trace_stop"() : () -> ()
    %99 = vector.shape_cast %98 : vector<2x8x8xf32> to vector<16x8xf32>
    %100 = arith.truncf %99 : vector<16x8xf32> to vector<16x8xbf16>
    %c1_60 = arith.constant 1 : index
    %c0_61 = arith.constant 0 : index
    %c0_62 = arith.constant 0 : index
    %101 = vector.load %arg9[%c1_60, %c0_61, %c0_62] : memref<4x8x32xbf16, #tpu.memory_space<vmem>>, vector<1x8x32xbf16>
    %102 = vector.shape_cast %101 : vector<1x8x32xbf16> to vector<8x32xbf16>
    %cst_63 = arith.constant dense<0.000000e+00> : vector<16x32xf32>
    %103 = tpu.matmul %100, %102, %cst_63 {dimension_numbers = #tpu.dot_dimension_numbers<[1], [0], [0], [1], [0, 0, 1, 1], [], []>} : vector<16x8xbf16>, vector<8x32xbf16>, vector<16x32xf32> -> vector<16x32xf32>
    %104 = arith.addf %54, %103 : vector<16x32xf32>
    %c2 = arith.constant 2 : index
    %c0_64 = arith.constant 0 : index
    %c0_65 = arith.constant 0 : index
    %105 = vector.load %arg3[%c2, %c0_64, %c0_65] : memref<4x32x8xbf16, #tpu.memory_space<vmem>>, vector<1x32x8xbf16>
    %106 = vector.shape_cast %105 : vector<1x32x8xbf16> to vector<32x8xbf16>
    %cst_66 = arith.constant dense<0.000000e+00> : vector<16x8xf32>
    %107 = tpu.matmul %2, %106, %cst_66 {dimension_numbers = #tpu.dot_dimension_numbers<[1], [0], [0], [1], [0, 0, 1, 1], [], []>} : vector<16x32xbf16>, vector<32x8xbf16>, vector<16x8xf32> -> vector<16x8xf32>
    %c2_67 = arith.constant 2 : index
    %c0_68 = arith.constant 0 : index
    %c0_69 = arith.constant 0 : index
    %108 = vector.load %arg4[%c2_67, %c0_68, %c0_69] : memref<4x1x8xf32, #tpu.memory_space<vmem>>, vector<1x1x8xf32>
    %109 = vector.shape_cast %108 : vector<1x1x8xf32> to vector<1x8xf32>
    %110 = vector.broadcast %109 : vector<1x8xf32> to vector<16x8xf32>
    %111 = arith.addf %107, %110 : vector<16x8xf32>
    %cst_70 = arith.constant 0.353553385 : f32
    %112 = vector.broadcast %cst_70 : f32 to vector<16x8xf32>
    %113 = arith.mulf %111, %112 : vector<16x8xf32>
    %c2_71 = arith.constant 2 : index
    %c0_72 = arith.constant 0 : index
    %c0_73 = arith.constant 0 : index
    %114 = vector.load %arg5[%c2_71, %c0_72, %c0_73] : memref<4x32x8xbf16, #tpu.memory_space<vmem>>, vector<1x32x8xbf16>
    %115 = vector.shape_cast %114 : vector<1x32x8xbf16> to vector<32x8xbf16>
    %cst_74 = arith.constant dense<0.000000e+00> : vector<16x8xf32>
    %116 = tpu.matmul %2, %115, %cst_74 {dimension_numbers = #tpu.dot_dimension_numbers<[1], [0], [0], [1], [0, 0, 1, 1], [], []>} : vector<16x32xbf16>, vector<32x8xbf16>, vector<16x8xf32> -> vector<16x8xf32>
    %c2_75 = arith.constant 2 : index
    %c0_76 = arith.constant 0 : index
    %c0_77 = arith.constant 0 : index
    %117 = vector.load %arg6[%c2_75, %c0_76, %c0_77] : memref<4x1x8xf32, #tpu.memory_space<vmem>>, vector<1x1x8xf32>
    %118 = vector.shape_cast %117 : vector<1x1x8xf32> to vector<1x8xf32>
    %119 = vector.broadcast %118 : vector<1x8xf32> to vector<16x8xf32>
    %120 = arith.addf %116, %119 : vector<16x8xf32>
    %c2_78 = arith.constant 2 : index
    %c0_79 = arith.constant 0 : index
    %c0_80 = arith.constant 0 : index
    %121 = vector.load %arg7[%c2_78, %c0_79, %c0_80] : memref<4x32x8xbf16, #tpu.memory_space<vmem>>, vector<1x32x8xbf16>
    %122 = vector.shape_cast %121 : vector<1x32x8xbf16> to vector<32x8xbf16>
    %cst_81 = arith.constant dense<0.000000e+00> : vector<16x8xf32>
    %123 = tpu.matmul %2, %122, %cst_81 {dimension_numbers = #tpu.dot_dimension_numbers<[1], [0], [0], [1], [0, 0, 1, 1], [], []>} : vector<16x32xbf16>, vector<32x8xbf16>, vector<16x8xf32> -> vector<16x8xf32>
    %c2_82 = arith.constant 2 : index
    %c0_83 = arith.constant 0 : index
    %c0_84 = arith.constant 0 : index
    %124 = vector.load %arg8[%c2_82, %c0_83, %c0_84] : memref<4x1x8xf32, #tpu.memory_space<vmem>>, vector<1x1x8xf32>
    %125 = vector.shape_cast %124 : vector<1x1x8xf32> to vector<1x8xf32>
    %126 = vector.broadcast %125 : vector<1x8xf32> to vector<16x8xf32>
    %127 = arith.addf %123, %126 : vector<16x8xf32>
    %128 = vector.shape_cast %113 : vector<16x8xf32> to vector<2x8x8xf32>
    %129 = arith.truncf %128 : vector<2x8x8xf32> to vector<2x8x8xbf16>
    %130 = vector.shape_cast %120 : vector<16x8xf32> to vector<2x8x8xf32>
    %131 = arith.truncf %130 : vector<2x8x8xf32> to vector<2x8x8xbf16>
    %132 = vector.shape_cast %127 : vector<16x8xf32> to vector<2x8x8xf32>
    %133 = arith.truncf %132 : vector<2x8x8xf32> to vector<2x8x8xbf16>
    "tpu.trace_start"() <{level = 10 : i32, message = "bqd,bkd->bqk"}> : () -> ()
    %cst_85 = arith.constant dense<0.000000e+00> : vector<2x8x8xf32>
    %134 = tpu.matmul %129, %131, %cst_85 {dimension_numbers = #tpu.dot_dimension_numbers<[2], [2], [1], [1], [0, 0, 0, 1, 1, 1], [0], [0]>} : vector<2x8x8xbf16>, vector<2x8x8xbf16>, vector<2x8x8xf32> -> vector<2x8x8xf32>
    "tpu.trace_stop"() : () -> ()
    %135 = vector.broadcast %3 : vector<2x1x8xf32> to vector<2x8x8xf32>
    %136 = arith.addf %134, %135 : vector<2x8x8xf32>
    %cst_86 = arith.constant dense<0xFF800000> : vector<2x8xf32>
    %137 = vector.multi_reduction <maximumf>, %136, %cst_86 [2] : vector<2x8x8xf32> to vector<2x8xf32>
    %138 = vector.shape_cast %137 : vector<2x8xf32> to vector<2x8x1xf32>
    %139 = vector.broadcast %138 : vector<2x8x1xf32> to vector<2x8x8xf32>
    %140 = arith.subf %136, %139 : vector<2x8x8xf32>
    %141 = math.exp %140 : vector<2x8x8xf32>
    %cst_87 = arith.constant dense<0.000000e+00> : vector<2x8xf32>
    %142 = vector.multi_reduction <add>, %141, %cst_87 [2] : vector<2x8x8xf32> to vector<2x8xf32>
    %143 = vector.shape_cast %142 : vector<2x8xf32> to vector<2x8x1xf32>
    %144 = tpu.reciprocal %143 {approx = true} : vector<2x8x1xf32> -> vector<2x8x1xf32>
    %145 = vector.broadcast %144 : vector<2x8x1xf32> to vector<2x8x8xf32>
    %146 = arith.mulf %141, %145 : vector<2x8x8xf32>
    %147 = arith.truncf %146 : vector<2x8x8xf32> to vector<2x8x8xbf16>
    "tpu.trace_start"() <{level = 10 : i32, message = "bqk,bkd->bqd"}> : () -> ()
    %cst_88 = arith.constant dense<0.000000e+00> : vector<2x8x8xf32>
    %148 = tpu.matmul %147, %133, %cst_88 {dimension_numbers = #tpu.dot_dimension_numbers<[2], [1], [1], [2], [0, 0, 0, 1, 1, 2], [0], [0]>} : vector<2x8x8xbf16>, vector<2x8x8xbf16>, vector<2x8x8xf32> -> vector<2x8x8xf32>
    "tpu.trace_stop"() : () -> ()
    %149 = vector.shape_cast %148 : vector<2x8x8xf32> to vector<16x8xf32>
    %150 = arith.truncf %149 : vector<16x8xf32> to vector<16x8xbf16>
    %c2_89 = arith.constant 2 : index
    %c0_90 = arith.constant 0 : index
    %c0_91 = arith.constant 0 : index
    %151 = vector.load %arg9[%c2_89, %c0_90, %c0_91] : memref<4x8x32xbf16, #tpu.memory_space<vmem>>, vector<1x8x32xbf16>
    %152 = vector.shape_cast %151 : vector<1x8x32xbf16> to vector<8x32xbf16>
    %cst_92 = arith.constant dense<0.000000e+00> : vector<16x32xf32>
    %153 = tpu.matmul %150, %152, %cst_92 {dimension_numbers = #tpu.dot_dimension_numbers<[1], [0], [0], [1], [0, 0, 1, 1], [], []>} : vector<16x8xbf16>, vector<8x32xbf16>, vector<16x32xf32> -> vector<16x32xf32>
    %154 = arith.addf %104, %153 : vector<16x32xf32>
    %c3 = arith.constant 3 : index
    %c0_93 = arith.constant 0 : index
    %c0_94 = arith.constant 0 : index
    %155 = vector.load %arg3[%c3, %c0_93, %c0_94] : memref<4x32x8xbf16, #tpu.memory_space<vmem>>, vector<1x32x8xbf16>
    %156 = vector.shape_cast %155 : vector<1x32x8xbf16> to vector<32x8xbf16>
    %cst_95 = arith.constant dense<0.000000e+00> : vector<16x8xf32>
    %157 = tpu.matmul %2, %156, %cst_95 {dimension_numbers = #tpu.dot_dimension_numbers<[1], [0], [0], [1], [0, 0, 1, 1], [], []>} : vector<16x32xbf16>, vector<32x8xbf16>, vector<16x8xf32> -> vector<16x8xf32>
    %c3_96 = arith.constant 3 : index
    %c0_97 = arith.constant 0 : index
    %c0_98 = arith.constant 0 : index
    %158 = vector.load %arg4[%c3_96, %c0_97, %c0_98] : memref<4x1x8xf32, #tpu.memory_space<vmem>>, vector<1x1x8xf32>
    %159 = vector.shape_cast %158 : vector<1x1x8xf32> to vector<1x8xf32>
    %160 = vector.broadcast %159 : vector<1x8xf32> to vector<16x8xf32>
    %161 = arith.addf %157, %160 : vector<16x8xf32>
    %cst_99 = arith.constant 0.353553385 : f32
    %162 = vector.broadcast %cst_99 : f32 to vector<16x8xf32>
    %163 = arith.mulf %161, %162 : vector<16x8xf32>
    %c3_100 = arith.constant 3 : index
    %c0_101 = arith.constant 0 : index
    %c0_102 = arith.constant 0 : index
    %164 = vector.load %arg5[%c3_100, %c0_101, %c0_102] : memref<4x32x8xbf16, #tpu.memory_space<vmem>>, vector<1x32x8xbf16>
    %165 = vector.shape_cast %164 : vector<1x32x8xbf16> to vector<32x8xbf16>
    %cst_103 = arith.constant dense<0.000000e+00> : vector<16x8xf32>
    %166 = tpu.matmul %2, %165, %cst_103 {dimension_numbers = #tpu.dot_dimension_numbers<[1], [0], [0], [1], [0, 0, 1, 1], [], []>} : vector<16x32xbf16>, vector<32x8xbf16>, vector<16x8xf32> -> vector<16x8xf32>
    %c3_104 = arith.constant 3 : index
    %c0_105 = arith.constant 0 : index
    %c0_106 = arith.constant 0 : index
    %167 = vector.load %arg6[%c3_104, %c0_105, %c0_106] : memref<4x1x8xf32, #tpu.memory_space<vmem>>, vector<1x1x8xf32>
    %168 = vector.shape_cast %167 : vector<1x1x8xf32> to vector<1x8xf32>
    %169 = vector.broadcast %168 : vector<1x8xf32> to vector<16x8xf32>
    %170 = arith.addf %166, %169 : vector<16x8xf32>
    %c3_107 = arith.constant 3 : index
    %c0_108 = arith.constant 0 : index
    %c0_109 = arith.constant 0 : index
    %171 = vector.load %arg7[%c3_107, %c0_108, %c0_109] : memref<4x32x8xbf16, #tpu.memory_space<vmem>>, vector<1x32x8xbf16>
    %172 = vector.shape_cast %171 : vector<1x32x8xbf16> to vector<32x8xbf16>
    %cst_110 = arith.constant dense<0.000000e+00> : vector<16x8xf32>
    %173 = tpu.matmul %2, %172, %cst_110 {dimension_numbers = #tpu.dot_dimension_numbers<[1], [0], [0], [1], [0, 0, 1, 1], [], []>} : vector<16x32xbf16>, vector<32x8xbf16>, vector<16x8xf32> -> vector<16x8xf32>
    %c3_111 = arith.constant 3 : index
    %c0_112 = arith.constant 0 : index
    %c0_113 = arith.constant 0 : index
    %174 = vector.load %arg8[%c3_111, %c0_112, %c0_113] : memref<4x1x8xf32, #tpu.memory_space<vmem>>, vector<1x1x8xf32>
    %175 = vector.shape_cast %174 : vector<1x1x8xf32> to vector<1x8xf32>
    %176 = vector.broadcast %175 : vector<1x8xf32> to vector<16x8xf32>
    %177 = arith.addf %173, %176 : vector<16x8xf32>
    %178 = vector.shape_cast %163 : vector<16x8xf32> to vector<2x8x8xf32>
    %179 = arith.truncf %178 : vector<2x8x8xf32> to vector<2x8x8xbf16>
    %180 = vector.shape_cast %170 : vector<16x8xf32> to vector<2x8x8xf32>
    %181 = arith.truncf %180 : vector<2x8x8xf32> to vector<2x8x8xbf16>
    %182 = vector.shape_cast %177 : vector<16x8xf32> to vector<2x8x8xf32>
    %183 = arith.truncf %182 : vector<2x8x8xf32> to vector<2x8x8xbf16>
    "tpu.trace_start"() <{level = 10 : i32, message = "bqd,bkd->bqk"}> : () -> ()
    %cst_114 = arith.constant dense<0.000000e+00> : vector<2x8x8xf32>
    %184 = tpu.matmul %179, %181, %cst_114 {dimension_numbers = #tpu.dot_dimension_numbers<[2], [2], [1], [1], [0, 0, 0, 1, 1, 1], [0], [0]>} : vector<2x8x8xbf16>, vector<2x8x8xbf16>, vector<2x8x8xf32> -> vector<2x8x8xf32>
    "tpu.trace_stop"() : () -> ()
    %185 = vector.broadcast %3 : vector<2x1x8xf32> to vector<2x8x8xf32>
    %186 = arith.addf %184, %185 : vector<2x8x8xf32>
    %cst_115 = arith.constant dense<0xFF800000> : vector<2x8xf32>
    %187 = vector.multi_reduction <maximumf>, %186, %cst_115 [2] : vector<2x8x8xf32> to vector<2x8xf32>
    %188 = vector.shape_cast %187 : vector<2x8xf32> to vector<2x8x1xf32>
    %189 = vector.broadcast %188 : vector<2x8x1xf32> to vector<2x8x8xf32>
    %190 = arith.subf %186, %189 : vector<2x8x8xf32>
    %191 = math.exp %190 : vector<2x8x8xf32>
    %cst_116 = arith.constant dense<0.000000e+00> : vector<2x8xf32>
    %192 = vector.multi_reduction <add>, %191, %cst_116 [2] : vector<2x8x8xf32> to vector<2x8xf32>
    %193 = vector.shape_cast %192 : vector<2x8xf32> to vector<2x8x1xf32>
    %194 = tpu.reciprocal %193 {approx = true} : vector<2x8x1xf32> -> vector<2x8x1xf32>
    %195 = vector.broadcast %194 : vector<2x8x1xf32> to vector<2x8x8xf32>
    %196 = arith.mulf %191, %195 : vector<2x8x8xf32>
    %197 = arith.truncf %196 : vector<2x8x8xf32> to vector<2x8x8xbf16>
    "tpu.trace_start"() <{level = 10 : i32, message = "bqk,bkd->bqd"}> : () -> ()
    %cst_117 = arith.constant dense<0.000000e+00> : vector<2x8x8xf32>
    %198 = tpu.matmul %197, %183, %cst_117 {dimension_numbers = #tpu.dot_dimension_numbers<[2], [1], [1], [2], [0, 0, 0, 1, 1, 2], [0], [0]>} : vector<2x8x8xbf16>, vector<2x8x8xbf16>, vector<2x8x8xf32> -> vector<2x8x8xf32>
    "tpu.trace_stop"() : () -> ()
    %199 = vector.shape_cast %198 : vector<2x8x8xf32> to vector<16x8xf32>
    %200 = arith.truncf %199 : vector<16x8xf32> to vector<16x8xbf16>
    %c3_118 = arith.constant 3 : index
    %c0_119 = arith.constant 0 : index
    %c0_120 = arith.constant 0 : index
    %201 = vector.load %arg9[%c3_118, %c0_119, %c0_120] : memref<4x8x32xbf16, #tpu.memory_space<vmem>>, vector<1x8x32xbf16>
    %202 = vector.shape_cast %201 : vector<1x8x32xbf16> to vector<8x32xbf16>
    %cst_121 = arith.constant dense<0.000000e+00> : vector<16x32xf32>
    %203 = tpu.matmul %200, %202, %cst_121 {dimension_numbers = #tpu.dot_dimension_numbers<[1], [0], [0], [1], [0, 0, 1, 1], [], []>} : vector<16x8xbf16>, vector<8x32xbf16>, vector<16x32xf32> -> vector<16x32xf32>
    %204 = arith.addf %154, %203 : vector<16x32xf32>
    %c0_122 = arith.constant 0 : index
    %c0_123 = arith.constant 0 : index
    %205 = vector.load %arg10[%c0_122, %c0_123] : memref<1x32xf32, #tpu.memory_space<vmem>>, vector<1x32xf32>
    %206 = vector.broadcast %205 : vector<1x32xf32> to vector<16x32xf32>
    %207 = arith.addf %204, %206 : vector<16x32xf32>
    %208 = arith.addf %207, %1 : vector<16x32xf32>
    %c0_124 = arith.constant 0 : index
    %c0_125 = arith.constant 0 : index
    %209 = vector.load %arg11[%c0_124, %c0_125] : memref<1x32xf32, #tpu.memory_space<vmem>>, vector<1x32xf32>
    %c0_126 = arith.constant 0 : index
    %c0_127 = arith.constant 0 : index
    %210 = vector.load %arg12[%c0_126, %c0_127] : memref<1x32xf32, #tpu.memory_space<vmem>>, vector<1x32xf32>
    %cst_128 = arith.constant dense<0.000000e+00> : vector<16xf32>
    %211 = vector.multi_reduction <add>, %208, %cst_128 [1] : vector<16x32xf32> to vector<16xf32>
    %212 = vector.shape_cast %211 : vector<16xf32> to vector<16x1xf32>
    %cst_129 = arith.constant 3.200000e+01 : f32
    %213 = vector.broadcast %cst_129 : f32 to vector<16x1xf32>
    %214 = arith.divf %212, %213 : vector<16x1xf32>
    %215 = vector.broadcast %214 : vector<16x1xf32> to vector<16x32xf32>
    %216 = arith.subf %208, %215 : vector<16x32xf32>
    %217 = arith.mulf %216, %216 : vector<16x32xf32>
    %cst_130 = arith.constant dense<0.000000e+00> : vector<16xf32>
    %218 = vector.multi_reduction <add>, %217, %cst_130 [1] : vector<16x32xf32> to vector<16xf32>
    %219 = vector.shape_cast %218 : vector<16xf32> to vector<16x1xf32>
    %cst_131 = arith.constant 3.200000e+01 : f32
    %220 = vector.broadcast %cst_131 : f32 to vector<16x1xf32>
    %221 = arith.divf %219, %220 : vector<16x1xf32>
    %cst_132 = arith.constant 9.99999996E-13 : f32
    %222 = vector.broadcast %cst_132 : f32 to vector<16x1xf32>
    %223 = arith.addf %221, %222 : vector<16x1xf32>
    %224 = math.rsqrt %223 : vector<16x1xf32>
    %225 = vector.broadcast %224 : vector<16x1xf32> to vector<16x32xf32>
    %226 = arith.mulf %216, %225 : vector<16x32xf32>
    %227 = vector.broadcast %209 : vector<1x32xf32> to vector<16x32xf32>
    %228 = arith.mulf %227, %226 : vector<16x32xf32>
    %229 = vector.broadcast %210 : vector<1x32xf32> to vector<16x32xf32>
    %230 = arith.addf %228, %229 : vector<16x32xf32>
    %231 = arith.truncf %230 : vector<16x32xf32> to vector<16x32xbf16>
    %c0_133 = arith.constant 0 : index
    %c0_134 = arith.constant 0 : index
    %232 = vector.load %arg13[%c0_133, %c0_134] : memref<32x64xbf16, #tpu.memory_space<vmem>>, vector<32x64xbf16>
    %cst_135 = arith.constant dense<0.000000e+00> : vector<16x64xf32>
    %233 = tpu.matmul %231, %232, %cst_135 {dimension_numbers = #tpu.dot_dimension_numbers<[1], [0], [0], [1], [0, 0, 1, 1], [], []>} : vector<16x32xbf16>, vector<32x64xbf16>, vector<16x64xf32> -> vector<16x64xf32>
    %c0_136 = arith.constant 0 : index
    %c0_137 = arith.constant 0 : index
    %234 = vector.load %arg14[%c0_136, %c0_137] : memref<1x64xf32, #tpu.memory_space<vmem>>, vector<1x64xf32>
    %235 = vector.broadcast %234 : vector<1x64xf32> to vector<16x64xf32>
    %236 = arith.addf %233, %235 : vector<16x64xf32>
    %cst_138 = arith.constant 0.000000e+00 : f32
    %237 = vector.broadcast %cst_138 : f32 to vector<16x64xf32>
    %238 = arith.maximumf %236, %237 : vector<16x64xf32>
    %239 = arith.truncf %238 : vector<16x64xf32> to vector<16x64xbf16>
    %c0_139 = arith.constant 0 : index
    %c0_140 = arith.constant 0 : index
    %240 = vector.load %arg15[%c0_139, %c0_140] : memref<64x32xbf16, #tpu.memory_space<vmem>>, vector<64x32xbf16>
    %cst_141 = arith.constant dense<0.000000e+00> : vector<16x32xf32>
    %241 = tpu.matmul %239, %240, %cst_141 {dimension_numbers = #tpu.dot_dimension_numbers<[1], [0], [0], [1], [0, 0, 1, 1], [], []>} : vector<16x64xbf16>, vector<64x32xbf16>, vector<16x32xf32> -> vector<16x32xf32>
    %c0_142 = arith.constant 0 : index
    %c0_143 = arith.constant 0 : index
    %242 = vector.load %arg16[%c0_142, %c0_143] : memref<1x32xf32, #tpu.memory_space<vmem>>, vector<1x32xf32>
    %243 = vector.broadcast %242 : vector<1x32xf32> to vector<16x32xf32>
    %244 = arith.addf %241, %243 : vector<16x32xf32>
    %245 = arith.addf %244, %230 : vector<16x32xf32>
    %c0_144 = arith.constant 0 : index
    %c0_145 = arith.constant 0 : index
    %246 = vector.load %arg17[%c0_144, %c0_145] : memref<1x32xf32, #tpu.memory_space<vmem>>, vector<1x32xf32>
    %c0_146 = arith.constant 0 : index
    %c0_147 = arith.constant 0 : index
    %247 = vector.load %arg18[%c0_146, %c0_147] : memref<1x32xf32, #tpu.memory_space<vmem>>, vector<1x32xf32>
    %cst_148 = arith.constant dense<0.000000e+00> : vector<16xf32>
    %248 = vector.multi_reduction <add>, %245, %cst_148 [1] : vector<16x32xf32> to vector<16xf32>
    %249 = vector.shape_cast %248 : vector<16xf32> to vector<16x1xf32>
    %cst_149 = arith.constant 3.200000e+01 : f32
    %250 = vector.broadcast %cst_149 : f32 to vector<16x1xf32>
    %251 = arith.divf %249, %250 : vector<16x1xf32>
    %252 = vector.broadcast %251 : vector<16x1xf32> to vector<16x32xf32>
    %253 = arith.subf %245, %252 : vector<16x32xf32>
    %254 = arith.mulf %253, %253 : vector<16x32xf32>
    %cst_150 = arith.constant dense<0.000000e+00> : vector<16xf32>
    %255 = vector.multi_reduction <add>, %254, %cst_150 [1] : vector<16x32xf32> to vector<16xf32>
    %256 = vector.shape_cast %255 : vector<16xf32> to vector<16x1xf32>
    %cst_151 = arith.constant 3.200000e+01 : f32
    %257 = vector.broadcast %cst_151 : f32 to vector<16x1xf32>
    %258 = arith.divf %256, %257 : vector<16x1xf32>
    %cst_152 = arith.constant 9.99999996E-13 : f32
    %259 = vector.broadcast %cst_152 : f32 to vector<16x1xf32>
    %260 = arith.addf %258, %259 : vector<16x1xf32>
    %261 = math.rsqrt %260 : vector<16x1xf32>
    %262 = vector.broadcast %261 : vector<16x1xf32> to vector<16x32xf32>
    %263 = arith.mulf %253, %262 : vector<16x32xf32>
    %264 = vector.broadcast %246 : vector<1x32xf32> to vector<16x32xf32>
    %265 = arith.mulf %264, %263 : vector<16x32xf32>
    %266 = vector.broadcast %247 : vector<1x32xf32> to vector<16x32xf32>
    %267 = arith.addf %265, %266 : vector<16x32xf32>
    %268 = vector.shape_cast %267 : vector<16x32xf32> to vector<2x8x32xf32>
    %c0_153 = arith.constant 0 : index
    %c0_154 = arith.constant 0 : index
    %c0_155 = arith.constant 0 : index
    %269 = vector.load %arg19[%c0_153, %c0_154, %c0_155] : memref<2x8x32xf32, #tpu.memory_space<vmem>>, vector<2x8x32xf32>
    tpu.vector_store %arg19[%c0_153, %c0_154, %c0_155], %268 {strides = array<i32>} : memref<2x8x32xf32, #tpu.memory_space<vmem>>, vector<2x8x32xf32>,
    return
  }
  func.func @transform_0(%arg0: i32) -> (i32, i32, i32) {
    %c0_i32 = arith.constant 0 : i32
    %c0_i32_0 = arith.constant 0 : i32
    %c0_i32_1 = arith.constant 0 : i32
    return %arg0, %c0_i32, %c0_i32_0 : i32, i32, i32
  }
  func.func @transform_1(%arg0: i32) -> (i32, i32, i32) {
    %c0_i32 = arith.constant 0 : i32
    %c0_i32_0 = arith.constant 0 : i32
    %c0_i32_1 = arith.constant 0 : i32
    return %arg0, %c0_i32, %c0_i32_0 : i32, i32, i32
  }
  func.func @transform_2(%arg0: i32) -> (i32, i32, i32) {
    %c0_i32 = arith.constant 0 : i32
    %c0_i32_0 = arith.constant 0 : i32
    %c0_i32_1 = arith.constant 0 : i32
    %c0_i32_2 = arith.constant 0 : i32
    return %c0_i32, %c0_i32_0, %c0_i32_1 : i32, i32, i32
  }
  func.func @transform_3(%arg0: i32) -> (i32, i32, i32) {
    %c0_i32 = arith.constant 0 : i32
    %c0_i32_0 = arith.constant 0 : i32
    %c0_i32_1 = arith.constant 0 : i32
    %c0_i32_2 = arith.constant 0 : i32
    return %c0_i32, %c0_i32_0, %c0_i32_1 : i32, i32, i32
  }
  func.func @transform_4(%arg0: i32) -> (i32, i32, i32) {
    %c0_i32 = arith.constant 0 : i32
    %c0_i32_0 = arith.constant 0 : i32
    %c0_i32_1 = arith.constant 0 : i32
    %c0_i32_2 = arith.constant 0 : i32
    return %c0_i32, %c0_i32_0, %c0_i32_1 : i32, i32, i32
  }
  func.func @transform_5(%arg0: i32) -> (i32, i32, i32) {
    %c0_i32 = arith.constant 0 : i32
    %c0_i32_0 = arith.constant 0 : i32
    %c0_i32_1 = arith.constant 0 : i32
    %c0_i32_2 = arith.constant 0 : i32
    return %c0_i32, %c0_i32_0, %c0_i32_1 : i32, i32, i32
  }
  func.func @transform_6(%arg0: i32) -> (i32, i32, i32) {
    %c0_i32 = arith.constant 0 : i32
    %c0_i32_0 = arith.constant 0 : i32
    %c0_i32_1 = arith.constant 0 : i32
    %c0_i32_2 = arith.constant 0 : i32
    return %c0_i32, %c0_i32_0, %c0_i32_1 : i32, i32, i32
  }
  func.func @transform_7(%arg0: i32) -> (i32, i32, i32) {
    %c0_i32 = arith.constant 0 : i32
    %c0_i32_0 = arith.constant 0 : i32
    %c0_i32_1 = arith.constant 0 : i32
    %c0_i32_2 = arith.constant 0 : i32
    return %c0_i32, %c0_i32_0, %c0_i32_1 : i32, i32, i32
  }
  func.func @transform_8(%arg0: i32) -> (i32, i32, i32) {
    %c0_i32 = arith.constant 0 : i32
    %c0_i32_0 = arith.constant 0 : i32
    %c0_i32_1 = arith.constant 0 : i32
    %c0_i32_2 = arith.constant 0 : i32
    return %c0_i32, %c0_i32_0, %c0_i32_1 : i32, i32, i32
  }
  func.func @transform_9(%arg0: i32) -> (i32, i32) {
    %c0_i32 = arith.constant 0 : i32
    %c0_i32_0 = arith.constant 0 : i32
    %c0_i32_1 = arith.constant 0 : i32
    return %c0_i32, %c0_i32_0 : i32, i32
  }
  func.func @transform_10(%arg0: i32) -> (i32, i32) {
    %c0_i32 = arith.constant 0 : i32
    %c0_i32_0 = arith.constant 0 : i32
    %c0_i32_1 = arith.constant 0 : i32
    return %c0_i32, %c0_i32_0 : i32, i32
  }
  func.func @transform_11(%arg0: i32) -> (i32, i32) {
    %c0_i32 = arith.constant 0 : i32
    %c0_i32_0 = arith.constant 0 : i32
    %c0_i32_1 = arith.constant 0 : i32
    return %c0_i32, %c0_i32_0 : i32, i32
  }
  func.func @transform_12(%arg0: i32) -> (i32, i32) {
    %c0_i32 = arith.constant 0 : i32
    %c0_i32_0 = arith.constant 0 : i32
    %c0_i32_1 = arith.constant 0 : i32
    return %c0_i32, %c0_i32_0 : i32, i32
  }
  func.func @transform_13(%arg0: i32) -> (i32, i32) {
    %c0_i32 = arith.constant 0 : i32
    %c0_i32_0 = arith.constant 0 : i32
    %c0_i32_1 = arith.constant 0 : i32
    return %c0_i32, %c0_i32_0 : i32, i32
  }
  func.func @transform_14(%arg0: i32) -> (i32, i32) {
    %c0_i32 = arith.constant 0 : i32
    %c0_i32_0 = arith.constant 0 : i32
    %c0_i32_1 = arith.constant 0 : i32
    return %c0_i32, %c0_i32_0 : i32, i32
  }
  func.func @transform_15(%arg0: i32) -> (i32, i32) {
    %c0_i32 = arith.constant 0 : i32
    %c0_i32_0 = arith.constant 0 : i32
    %c0_i32_1 = arith.constant 0 : i32
    return %c0_i32, %c0_i32_0 : i32, i32
  }
  func.func @transform_16(%arg0: i32) -> (i32, i32) {
    %c0_i32 = arith.constant 0 : i32
    %c0_i32_0 = arith.constant 0 : i32
    %c0_i32_1 = arith.constant 0 : i32
    return %c0_i32, %c0_i32_0 : i32, i32
  }
  func.func @transform_17(%arg0: i32) -> (i32, i32) {
    %c0_i32 = arith.constant 0 : i32
    %c0_i32_0 = arith.constant 0 : i32
    %c0_i32_1 = arith.constant 0 : i32
    return %c0_i32, %c0_i32_0 : i32, i32
  }
  func.func @transform_18(%arg0: i32) -> (i32, i32, i32) {
    %c0_i32 = arith.constant 0 : i32
    %c0_i32_0 = arith.constant 0 : i32
    %c0_i32_1 = arith.constant 0 : i32
    return %arg0, %c0_i32, %c0_i32_0 : i32, i32, i32
  }
}

</mosaic_0001>

<bundles_post_ra>
// kernel: tpu_custom_call.1
= control target key start
LH: loop header
LB: loop body
LE: loop exit
PB: predicated region body
PF: predicated region fallthrough
CT: control target
= control target key end

     0   :  { %s3299_s0 = inlined_call_operand.vmem [shape: f32[2,8,32], index: 0, kind: input, shape index: {}]   ;;  %s3300_s1 = inlined_call_operand.vmem [shape: f32[2,1,8], index: 1, kind: input, shape index: {}]   ;;  %s3301_s2 = inlined_call_operand.vmem [shape: bf16[4,32,8], index: 2, kind: input, shape index: {}]   ;;  %s3302_s3 = inlined_call_operand.vmem [shape: f32[4,1,8], index: 3, kind: input, shape index: {}]   ;;  %s3303_s4 = inlined_call_operand.vmem [shape: bf16[4,32,8], index: 4, kind: input, shape index: {}]   ;;  %s3304_s5 = inlined_call_operand.vmem [shape: f32[4,1,8], index: 5, kind: input, shape index: {}]   ;;  %s3305_s6 = inlined_call_operand.vmem [shape: bf16[4,32,8], index: 6, kind: input, shape index: {}]   ;;  %s3306_s7 = inlined_call_operand.vmem [shape: f32[4,1,8], index: 7, kind: input, shape index: {}]   ;;  %s3307_s8 = inlined_call_operand.vmem [shape: bf16[4,8,32], index: 8, kind: input, shape index: {}]   ;;  %s3308_s9 = inlined_call_operand.vmem [shape: f32[1,32], index: 9, kind: input, shape index: {}]   ;;  %s3309_s10 = inlined_call_operand.vmem [shape: f32[1,32], index: 10, kind: input, shape index: {}]   ;;  %s3310_s11 = inlined_call_operand.vmem [shape: f32[1,32], index: 11, kind: input, shape index: {}]   ;;  %s3311_s12 = inlined_call_operand.vmem [shape: bf16[32,64], index: 12, kind: input, shape index: {}]   ;;  %s3312_s13 = inlined_call_operand.vmem [shape: f32[1,64], index: 13, kind: input, shape index: {}]   ;;  %s3313_s14 = inlined_call_operand.vmem [shape: bf16[64,32], index: 14, kind: input, shape index: {}]   ;;  %s3314_s15 = inlined_call_operand.vmem [shape: f32[1,32], index: 15, kind: input, shape index: {}]   ;;  %s3315_s16 = inlined_call_operand.vmem [shape: f32[1,32], index: 16, kind: input, shape index: {}]   ;;  %s3316_s17 = inlined_call_operand.vmem [shape: f32[1,32], index: 17, kind: input, shape index: {}]   ;;  %s3317_s18 = inlined_call_operand.hbm [shape: f32[2,8,32], index: 18, kind: output, shape index: {}]  }
   0x1   :  { %3321 = sst [smem:[#allocation5_spill]] %s3299_s0 }
   0x2   :  { %3322 = sst [smem:[#allocation6_spill]] %s3300_s1 }
   0x3   :  { %3323 = sst [smem:[#allocation7_spill]] %s3301_s2 }
   0x4   :  { %v2670_v0 = vld [vmem:[%s3303_s4] sm:$0xff]   ;;  %v2766_v1 = vmov 0.0   ;;  %s3324_s0 = sld [smem:[#allocation7_spill]]  ;;  %v2672_v3 = vld [vmem:[%s3303_s4 + $0x8] sm:$0xff]   ;;  %vm2767_vm0 = vmmov 0   ;;  %s3325_s23 = sld [smem:[#allocation5_spill]] }
   0x5   :  { %2437 = vmatprep.subr.bf16.mxu1 %v2766_v1  ;;  %2429 = vmatprep.subr.bf16.mxu0 %v2766_v1  ;;  %vm89_vm1 = vcmask 261120   ;;  %v2674_v8 = vld [vmem:[%s3305_s6] sm:$0xff]   ;;  %v2675_v9 = vld [vmem:[%s3305_s6 + $0x8] sm:$0xff]  }
   0x6   :  { %2438 = vmatpush3.bf16.msra.mxu1 %v2670_v0  ;;  %2441 = vmatprep.mubr.msk.bf16.mxu1 %vm2767_vm0, %v2766_v1 }
   0x7   :  { %2439 = vmatprep.subr.bf16.mxu1 %v2766_v1  ;;  %2433 = vmatprep.mubr.msk.bf16.mxu0 %vm2767_vm0, %v2766_v1 }
   0xa   :  { %v2671_v2 = vld [vmem:[%s3324_s0] sm:$0xff]   ;;  %v2673_v4 = vld [vmem:[%s3324_s0 + $0x8] sm:$0xff]   ;;  %2440 = vmatpush3.bf16.msra.mxu1 %v2672_v3 }
   0xb   :  { %2430 = vmatpush3.bf16.msra.mxu0 %v2671_v2  ;;  %v61_v5 = vld [vmem:[%s3325_s23] sm:$0xff]  ;;  %v62_v6 = vld [vmem:[%s3325_s23 + $0x8] sm:$0xff]  ;;  %2453 = vmatprep.subr.bf16.mxu1 %v2766_v1 }
   0xc   :  { %2431 = vmatprep.subr.bf16.mxu0 %v2766_v1  ;;  %v2892_v7 = vpack.c.bf16 %v62_v6, %v61_v5 }
   0xe   :  { %2442 = vmatmul.mubr.msk.bf16.vlgmr.msra.gmra.mrb[0].mxu1 %vm89_vm1, %v2892_v7 }
   0xf   :  { %2432 = vmatpush3.bf16.msra.mxu0 %v2673_v4  ;;  %2455 = vmatprep.mubr.msk.bf16.mxu1 %vm2767_vm0, %v2766_v1 }
  0x10   :  { %2445 = vmatprep.subr.bf16.mxu0 %v2766_v1 }
  0x12   :  { %2434 = vmatmul.mubr.msk.bf16.vlgmr.msra.gmra.mrb[0].mxu0 %vm89_vm1, %v2892_v7 }
  0x13   :  { %2446 = vmatpush3.bf16.msra.mxu0 %v2674_v8  ;;  %2449 = vmatprep.mubr.msk.bf16.mxu0 %vm2767_vm0, %v2766_v1 }
  0x14   :  { %2447 = vmatprep.subr.bf16.mxu0 %v2766_v1 }
  0x17   :  { %2448 = vmatpush3.bf16.msra.mxu0 %v2675_v9 }
  0x18   :  { %2459 = vmatprep.subr.bf16.mxu0 %v2766_v1 }
  0x1a   :  { %2450 = vmatmul.mubr.msk.bf16.vlgmr.msra.gmra.mrb[4].mxu0 %vm89_vm1, %v2892_v7 }
  0x1b   :  { %2461 = vmatprep.mubr.msk.bf16.mxu0 %vm2767_vm0, %v2766_v1 }
  0x1c   :  { %23 = vsyncpa [#allocation3], 0  ;;  %v2216_v10 = vld [vmem:[%s3304_s5] ss:$0 sm:$0xff]  ;;  %vm282_vm2 = vcmask 64512   ;;  %vm402_vm3 = vcmask 1043456  }
  0x1d   :  { %v2212_v11 = vld [vmem:[%s3302_s3] ss:$0 sm:$0xff]  ;;  %s3326_s25 = sld [smem:[#allocation6_spill]]  ;;  %v2676_v9 = vld [vmem:[%s3303_s4 + $0x10] sm:$0xff]   ;;  %vm2103_vm4 = vcmask 523264   ;;  %s2768_s20 = smov [#allocation2]  }
  0x1e   :  { %v2220_v29 = vld [vmem:[%s3306_s7] ss:$0 sm:$0xff]  ;;  %s2201_s21 = sshll.u32 %s2768_s20, 4  ;;  %s2202_s21 = int_to_ptr.vmem [resolvable:$true] %s2201_s21 }
  0x1f   :  { %s2742_s22 = scalar_lea.vmem %s2202_s21, 256  ;;  %p2747_p1 = scmp.lt.s32.totalorder %s2202_s21, %s2202_s21 }
  0x20   :  { %p2743_p0 = scmp.ne.s32.totalorder %s2202_s21, %s2742_s22  ;;  %p2748_p2 = scmp.lt.s32.totalorder %s2742_s22, %s2742_s22 }
  0x22   :  { %p2749_p3 = por %p2748_p2, %p2747_p1 }
  0x23   :  { %v2942_v44 = vld [vmem:[%s3326_s25 + $0x1] ss:$0 sm:$0xff]  ;;  %v2947_v46 = vld [vmem:[%s3326_s25] ss:$0 sm:$0xff] }
  0x24   :  { %p2750_p4 = pnand %p2749_p3, %p2743_p0 }
  0xe1   :  { %v193_v12 = vpop.f32.mrb[0].mxu1 }
  0xe2   :  { %v194_v13 = vadd.f32 %v2216_v10, %v193_v12  ;;  %v2443_v14 = vpop.f32.mrb[1].mxu1 }
  0xe3   :  { %v196_v16 = vpop.f32.mrb[2].mxu1  ;;  %v2678_v14 = vld [vmem:[%s3303_s4 + $0x18] sm:$0xff]  }
  0xe4   :  { %v266_v19 = vpack.c.bf16 %v194_v13, %v194_v13  ;;  %v197_v20 = vadd.f32 %v2216_v10, %v196_v16  ;;  %v2444_v21 = vpop.f32.mrb[3].mxu1  ;;  %v2677_v13 = vld [vmem:[%s3324_s0 + $0x10] sm:$0xff]   ;;  %v2679_v16 = vld [vmem:[%s3324_s0 + $0x18] sm:$0xff]  }
  0xe5   :  { %v127_v15 = vpop.f32.mrb[0].mxu0 }
  0xe6   :  { %v128_v17 = vadd.f32 %v2212_v11, %v127_v15  ;;  %v2435_v18 = vpop.f32.mrb[1].mxu0  ;;  %v287_v24 = vsel %vm282_vm2, %v266_v19, 0  ;;  %v267_v25 = vpack.c.bf16 %v197_v20, %v197_v20 }
  0xe7   :  { %v130_v22 = vpop.f32.mrb[2].mxu0  ;;  %2454 = vmatpush3.bf16.xpose.msra.mxu1 %v287_v24  ;;  %v2681_v18 = vld [vmem:[%s3305_s6 + $0x18] sm:$0xff]  }
  0xe8   :  { %v2436_v23 = vpop.f32.mrb[3].mxu0  ;;  %v134_v26 = vmul.f32 0.35355338, %v128_v17  ;;  %v131_v27 = vadd.f32 %v2212_v11, %v130_v22  ;;  %v333_v28 = vsel %vm282_vm2, %v267_v25, 0  ;;  %2465 = vmatprep.subr.bf16.mxu1 %v2766_v1  ;;  %v2680_v17 = vld [vmem:[%s3305_s6 + $0x10] sm:$0xff]  }
  0xe9   :  { %2460 = vmatpush3.bf16.xpose.msra.mxu0 %v333_v28 }
  0xea   :  { %v264_v30 = vpack.c.bf16 %v134_v26, %v134_v26  ;;  %v135_v31 = vmul.f32 0.35355338, %v131_v27  ;;  %2471 = vmatprep.subr.bf16.mxu0 %v2766_v1  ;;  %v2244_v27 = vld [vmem:[%s3304_s5 + $0x1] ss:$0 sm:$0xff] }
  0xec   :  { %v265_v39 = vpack.c.bf16 %v135_v31, %v135_v31 }
  0xed   :  { %v257_v32 = vpop.f32.mrb[4].mxu0 }
  0xee   :  { %v258_v33 = vadd.f32 %v2220_v29, %v257_v32  ;;  %v2451_v34 = vpop.f32.mrb[5].mxu0  ;;  %2456 = vmatmul.mubr.msk.bf16.vlgmr.msra.gmra.mrb[4].mxu1 %vm282_vm2, %v264_v30 }
  0xef   :  { %v260_v35 = vpop.f32.mrb[6].mxu0  ;;  %2467 = vmatprep.mubr.msk.bf16.mxu1 %vm2767_vm0, %v2766_v1 }
  0xf0   :  { %v268_v36 = vpack.c.bf16 %v258_v33, %v258_v33  ;;  %v261_v37 = vadd.f32 %v2220_v29, %v260_v35  ;;  %v2452_v38 = vpop.f32.mrb[7].mxu0  ;;  %2462 = vmatmul.mubr.msk.bf16.vlgmr.msra.gmra.mrb[8].mxu0 %vm282_vm2, %v265_v39  ;;  %v2235_v33 = vld [vmem:[%s3302_s3 + $0x1] ss:$0 sm:$0xff] }
  0xf1   :  { %2473 = vmatprep.mubr.msk.bf16.mxu0 %vm2767_vm0, %v2766_v1 }
  0xf2   :  { %v404_v40 = vsel %vm402_vm3, %v268_v36, 0  ;;  %v269_v41 = vpack.c.bf16 %v261_v37, %v261_v37 }
  0xf3   :  { %2466 = vmatpush3.bf16.msra.mxu1 %v404_v40 }
  0xf4   :  { %v450_v42 = vsel %vm402_vm3, %v269_v41, 0  ;;  %2477 = vmatprep.subr.bf16.mxu1 %v2766_v1 }
  0xf5   :  { %2472 = vmatpush3.bf16.msra.mxu0 %v450_v42 }
  0xf6   :  { %2485 = vmatprep.subr.bf16.mxu0 %v2766_v1 }
 0x1c1   :  { %v323_v43 = vpop.f32.mrb[4].mxu1 }
 0x1c2   :  { %v2457_v45 = vpop.f32.mrb[5].mxu1  ;;  %v324_v53 = vadd.f32 %v2947_v46, %v323_v43 }
 0x1c3   :  { %v326_v47 = vpop.f32.mrb[6].mxu1  ;;  %v369_v48 = vpop.f32.mrb[8].mxu0 }
 0x1c4   :  { %v370_v49 = vadd.f32 %v2942_v44, %v369_v48  ;;  %v2458_v50 = vpop.f32.mrb[7].mxu1  ;;  %v2463_v51 = vpop.f32.mrb[9].mxu0  ;;  %v375_v56 = vsel %vm282_vm2, %v324_v53, -inf }
 0x1c5   :  { %v372_v52 = vpop.f32.mrb[10].mxu0 }
 0x1c6   :  { %v2464_v54 = vpop.f32.mrb[11].mxu0  ;;  %v378_v55 = vsel %vm282_vm2, %v370_v49, -inf  ;;  %v2253_v52 = vld [vmem:[%s3306_s7 + $0x1] ss:$0 sm:$0xff] }
 0x1c7   :  { %379 = vmax.xlane.f32.xlu0 %v378_v55 }
 0x1cb   :  { %376 = vmax.xlane.f32.xlu0 %v375_v56 }
 0x254   :  { %v380_v57 = vpop.xlane.xlu0 %379 }
 0x255   :  { %v382_v58 = vsub.f32 %v370_v49, %v380_v57 }
 0x257   :  { %v385_v59 = vmul.f32 1.442695, %v382_v58 }
 0x258   :  { %v377_v60 = vpop.xlane.xlu0 %376 }
 0x259   :  { %2700 = vpow2.f32 %v385_v59  ;;  %v381_v61 = vsub.f32 %v324_v53, %v377_v60 }
 0x25b   :  { %v383_v62 = vmul.f32 1.442695, %v381_v61 }
 0x25d   :  { %2702 = vpow2.f32 %v383_v62 }
 0x263   :  { %v2701_v63 = vpop.eup %2700 }
 0x264   :  { %v390_v0 = vsel %vm282_vm2, %v2701_v63, 0.0 }
 0x265   :  { %391 = vadd.xlane.f32.xlu1 %v390_v0 }
 0x267   :  { %v2703_v2 = vpop.eup %2702 }
 0x268   :  { %v387_v3 = vsel %vm282_vm2, %v2703_v2, 0.0 }
 0x269   :  { %388 = vadd.xlane.f32.xlu1 %v387_v3 }
 0x2f2   :  { %v392_v4 = vpop.xlane.xlu1 %391 }
 0x2f3   :  { %2704 = vrcp.f32 %v392_v4 }
 0x2f6   :  { %v389_v5 = vpop.xlane.xlu1 %388 }
 0x2f7   :  { %2706 = vrcp.f32 %v389_v5 }
 0x2fd   :  { %v2705_v6 = vpop.eup %2704 }
 0x2fe   :  { %v396_v8 = vmul.f32 %v2705_v6, %v2701_v63 }
 0x300   :  { %v398_v10 = vpack.c.bf16 %v396_v8, %v396_v8 }
 0x301   :  { %v2707_v11 = vpop.eup %2706 }
 0x302   :  { %v395_v12 = vmul.f32 %v2707_v11, %v2703_v2  ;;  %2474 = vmatmul.mubr.msk.bf16.vlgmr.msra.gmra.mrb[12].mxu0 %vm282_vm2, %v398_v10 }
 0x303   :  { %2486 = vmatpush3.bf16.msra.mxu0 %v2676_v9  ;;  %2489 = vmatprep.mubr.msk.bf16.mxu0 %vm2767_vm0, %v2766_v1 }
 0x304   :  { %v397_v15 = vpack.c.bf16 %v395_v12, %v395_v12  ;;  %2487 = vmatprep.subr.bf16.mxu0 %v2766_v1 }
 0x306   :  { %2468 = vmatmul.mubr.msk.bf16.vlgmr.msra.gmra.mrb[8].mxu1 %vm282_vm2, %v397_v15 }
 0x307   :  { %2478 = vmatpush3.bf16.msra.mxu1 %v2677_v13  ;;  %2488 = vmatpush3.bf16.msra.mxu0 %v2678_v14 }
 0x308   :  { %2479 = vmatprep.subr.bf16.mxu1 %v2766_v1  ;;  %2481 = vmatprep.mubr.msk.bf16.mxu1 %vm2767_vm0, %v2766_v1 }
 0x309   :  { %2501 = vmatprep.subr.bf16.mxu0 %v2766_v1 }
 0x30a   :  { %2490 = vmatmul.mubr.msk.bf16.vlgmr.msra.gmra.mrb[16].mxu0 %vm89_vm1, %v2892_v7 }
 0x30b   :  { %2480 = vmatpush3.bf16.msra.mxu1 %v2679_v16  ;;  %2503 = vmatprep.mubr.msk.bf16.mxu0 %vm2767_vm0, %v2766_v1 }
 0x30c   :  { %2493 = vmatprep.subr.bf16.mxu1 %v2766_v1 }
 0x30e   :  { %2482 = vmatmul.mubr.msk.bf16.vlgmr.msra.gmra.mrb[12].mxu1 %vm89_vm1, %v2892_v7 }
 0x30f   :  { %2497 = vmatprep.mubr.msk.bf16.mxu1 %vm2767_vm0, %v2766_v1  ;;  %2494 = vmatpush3.bf16.msra.mxu1 %v2680_v17 }
 0x310   :  { %2495 = vmatprep.subr.bf16.mxu1 %v2766_v1 }
 0x313   :  { %2496 = vmatpush3.bf16.msra.mxu1 %v2681_v18 }
 0x314   :  { %2507 = vmatprep.subr.bf16.mxu1 %v2766_v1 }
 0x316   :  { %2498 = vmatmul.mubr.msk.bf16.vlgmr.msra.gmra.mrb[16].mxu1 %vm89_vm1, %v2892_v7 }
 0x317   :  { %2509 = vmatprep.mubr.msk.bf16.mxu1 %vm2767_vm0, %v2766_v1 }
 0x3d5   :  { %v2997_v19 = vpop.f32.mrb[12].mxu0 }
 0x3d6   :  { %v2475_v20 = vpop.f32.mrb[13].mxu0 }
 0x3d7   :  { %v489_v21 = vpop.f32.mrb[14].mxu0 }
 0x3d8   :  { %v2476_v22 = vpop.f32.mrb[15].mxu0 }
 0x3d9   :  { %v2999_v23 = vpop.f32.mrb[8].mxu1 }
 0x3da   :  { %v492_v24 = vpack.c.bf16 %v2997_v19, %v2999_v23  ;;  %v2469_v25 = vpop.f32.mrb[9].mxu1 }
 0x3db   :  { %v443_v26 = vpop.f32.mrb[10].mxu1 }
 0x3dc   :  { %v2470_v28 = vpop.f32.mrb[11].mxu1 }
 0x3dd   :  { %v621_v29 = vpop.f32.mrb[16].mxu0 }
 0x3de   :  { %v622_v30 = vadd.f32 %v2244_v27, %v621_v29  ;;  %v2491_v31 = vpop.f32.mrb[17].mxu0  ;;  %v2261_v29 = vld [vmem:[%s3307_s8 + $0x4] sm:$0xf] }
 0x3df   :  { %v624_v32 = vpop.f32.mrb[18].mxu0 }
 0x3e0   :  { %v696_v34 = vpack.c.bf16 %v622_v30, %v622_v30  ;;  %v625_v35 = vadd.f32 %v2244_v27, %v624_v32  ;;  %v2492_v36 = vpop.f32.mrb[19].mxu0  ;;  %v493_v32 = vld [vmem:[%s3307_s8] sm:$0xf] }
 0x3e1   :  { %v553_v37 = vpop.f32.mrb[12].mxu1 }
 0x3e2   :  { %v704_v38 = vsel %vm282_vm2, %v696_v34, 0  ;;  %v697_v39 = vpack.c.bf16 %v625_v35, %v625_v35  ;;  %v554_v40 = vadd.f32 %v2235_v33, %v553_v37  ;;  %v2483_v41 = vpop.f32.mrb[13].mxu1  ;;  %v915_v35 = vsel %vm402_vm3, %v2261_v29, 0 }
 0x3e3   :  { %v556_v42 = vpop.f32.mrb[14].mxu1  ;;  %2502 = vmatpush3.bf16.xpose.msra.mxu0 %v704_v38  ;;  %v962_v37 = vsel %vm402_vm3, %v493_v32, 0  ;;  %v2682_v38 = vld [vmem:[%s3303_s4 + $0x20] sm:$0xff]  }
 0x3e4   :  { %v750_v43 = vsel %vm282_vm2, %v697_v39, 0  ;;  %v560_v45 = vmul.f32 0.35355338, %v554_v40  ;;  %v557_v47 = vadd.f32 %v2235_v33, %v556_v42  ;;  %v2484_v48 = vpop.f32.mrb[15].mxu1  ;;  %2513 = vmatprep.subr.bf16.mxu0 %v2766_v1  ;;  %v2683_v39 = vld [vmem:[%s3303_s4 + $0x28] sm:$0xff]   ;;  %v2684_v41 = vld [vmem:[%s3324_s0 + $0x20] sm:$0xff]  }
 0x3e5   :  { %2508 = vmatpush3.bf16.xpose.msra.mxu1 %v750_v43 }
 0x3e6   :  { %v694_v49 = vpack.c.bf16 %v560_v45, %v560_v45  ;;  %v561_v50 = vmul.f32 0.35355338, %v557_v47  ;;  %2519 = vmatprep.subr.bf16.mxu1 %v2766_v1 }
 0x3e8   :  { %v695_v51 = vpack.c.bf16 %v561_v50, %v561_v50 }
 0x3e9   :  { %v687_v53 = vpop.f32.mrb[16].mxu1 }
 0x3ea   :  { %2504 = vmatmul.mubr.msk.bf16.vlgmr.msra.gmra.mrb[20].mxu0 %vm282_vm2, %v694_v49  ;;  %v688_v54 = vadd.f32 %v2253_v52, %v687_v53  ;;  %v2499_v55 = vpop.f32.mrb[17].mxu1  ;;  %v2685_v49 = vld [vmem:[%s3324_s0 + $0x28] sm:$0xff]  }
 0x3eb   :  { %2515 = vmatprep.mubr.msk.bf16.mxu0 %vm2767_vm0, %v2766_v1  ;;  %v690_v56 = vpop.f32.mrb[18].mxu1  ;;  %v2687_v55 = vld [vmem:[%s3305_s6 + $0x28] sm:$0xff]  }
 0x3ec   :  { %2510 = vmatmul.mubr.msk.bf16.vlgmr.msra.gmra.mrb[20].mxu1 %vm282_vm2, %v695_v51  ;;  %v698_v57 = vpack.c.bf16 %v688_v54, %v688_v54  ;;  %v691_v58 = vadd.f32 %v2253_v52, %v690_v56  ;;  %v2500_v59 = vpop.f32.mrb[19].mxu1  ;;  %v2686_v51 = vld [vmem:[%s3305_s6 + $0x20] sm:$0xff]  }
 0x3ed   :  { %2521 = vmatprep.mubr.msk.bf16.mxu1 %vm2767_vm0, %v2766_v1  ;;  %v2278_v56 = vld [vmem:[%s3304_s5 + $0x2] ss:$0 sm:$0xff] }
 0x3ee   :  { %v820_v60 = vsel %vm402_vm3, %v698_v57, 0  ;;  %v699_v61 = vpack.c.bf16 %v691_v58, %v691_v58 }
 0x3ef   :  { %2514 = vmatpush3.bf16.msra.mxu0 %v820_v60 }
 0x3f0   :  { %v866_v62 = vsel %vm402_vm3, %v699_v61, 0  ;;  %2525 = vmatprep.subr.bf16.mxu0 %v2766_v1 }
 0x3f1   :  { %2520 = vmatpush3.bf16.msra.mxu1 %v866_v62 }
 0x3f2   :  { %2531 = vmatprep.subr.bf16.mxu1 %v2766_v1 }
 0x4bd   :  { %v740_v63 = vpop.f32.mrb[20].mxu0 }
 0x4be   :  { %v741_v0 = vadd.f32 %v2947_v46, %v740_v63  ;;  %v2505_v2 = vpop.f32.mrb[21].mxu0 }
 0x4bf   :  { %v743_v3 = vpop.f32.mrb[22].mxu0  ;;  %v786_v4 = vpop.f32.mrb[20].mxu1 }
 0x4c0   :  { %v787_v5 = vadd.f32 %v2942_v44, %v786_v4  ;;  %v2506_v6 = vpop.f32.mrb[23].mxu0  ;;  %v2511_v8 = vpop.f32.mrb[21].mxu1  ;;  %v792_v9 = vsel %vm282_vm2, %v741_v0, -inf }
 0x4c1   :  { %v789_v10 = vpop.f32.mrb[22].mxu1  ;;  %793 = vmax.xlane.f32.xlu0 %v792_v9 }
 0x4c2   :  { %v2512_v11 = vpop.f32.mrb[23].mxu1  ;;  %v795_v12 = vsel %vm282_vm2, %v787_v5, -inf }
 0x4c3   :  { %796 = vmax.xlane.f32.xlu1 %v795_v12  ;;  %v2269_v11 = vld [vmem:[%s3302_s3 + $0x2] ss:$0 sm:$0xff] }
 0x54e   :  { %v794_v13 = vpop.xlane.xlu0 %793 }
 0x54f   :  { %v798_v14 = vsub.f32 %v741_v0, %v794_v13 }
 0x550   :  { %v797_v15 = vpop.xlane.xlu1 %796 }
 0x551   :  { %v800_v16 = vmul.f32 1.442695, %v798_v14  ;;  %v799_v17 = vsub.f32 %v787_v5, %v797_v15 }
 0x553   :  { %2708 = vpow2.f32 %v800_v16  ;;  %v802_v18 = vmul.f32 1.442695, %v799_v17 }
 0x555   :  { %2710 = vpow2.f32 %v802_v18 }
 0x55d   :  { %v2709_v20 = vpop.eup %2708 }
 0x55e   :  { %v804_v21 = vsel %vm282_vm2, %v2709_v20, 0.0 }
 0x55f   :  { %v2711_v22 = vpop.eup %2710  ;;  %805 = vadd.xlane.f32.xlu0 %v804_v21 }
 0x560   :  { %v807_v25 = vsel %vm282_vm2, %v2711_v22, 0.0 }
 0x561   :  { %808 = vadd.xlane.f32.xlu1 %v807_v25 }
 0x5ec   :  { %v806_v26 = vpop.xlane.xlu0 %805 }
 0x5ed   :  { %2712 = vrcp.f32 %v806_v26 }
 0x5ee   :  { %v809_v27 = vpop.xlane.xlu1 %808 }
 0x5ef   :  { %2714 = vrcp.f32 %v809_v27 }
 0x5f7   :  { %v2713_v28 = vpop.eup %2712 }
 0x5f8   :  { %v812_v30 = vmul.f32 %v2713_v28, %v2709_v20 }
 0x5f9   :  { %v2715_v31 = vpop.eup %2714 }
 0x5fa   :  { %v813_v33 = vmul.f32 %v2715_v31, %v2711_v22  ;;  %v814_v34 = vpack.c.bf16 %v812_v30, %v812_v30  ;;  %v2287_v22 = vld [vmem:[%s3306_s7 + $0x2] ss:$0 sm:$0xff] }
 0x5fc   :  { %2516 = vmatmul.mubr.msk.bf16.vlgmr.msra.gmra.mrb[24].mxu0 %vm282_vm2, %v814_v34  ;;  %v815_v36 = vpack.c.bf16 %v813_v33, %v813_v33 }
 0x5fd   :  { %2526 = vmatpush3.bf16.msra.mxu0 %v915_v35  ;;  %2527 = vmatprep.mubr.msk.bf16.mxu0 %vm2767_vm0, %v2766_v1 }
 0x5fe   :  { %2522 = vmatmul.mubr.msk.bf16.vlgmr.msra.gmra.mrb[24].mxu1 %vm282_vm2, %v815_v36  ;;  %2537 = vmatprep.subr.bf16.mxu0 %v2766_v1 }
 0x5ff   :  { %2532 = vmatpush3.bf16.msra.mxu1 %v962_v37  ;;  %2533 = vmatprep.mubr.msk.bf16.mxu1 %vm2767_vm0, %v2766_v1 }
 0x600   :  { %2545 = vmatprep.subr.bf16.mxu1 %v2766_v1 }
 0x606   :  { %2534 = vmatmul.mubr.msk.bf16.vlgmr.msra.gmra.mrb[28].mxu1 %vm282_vm2, %v492_v24 }
 0x607   :  { %2546 = vmatpush3.bf16.msra.mxu1 %v2682_v38  ;;  %2549 = vmatprep.mubr.msk.bf16.mxu1 %vm2767_vm0, %v2766_v1 }
 0x608   :  { %2547 = vmatprep.subr.bf16.mxu1 %v2766_v1 }
 0x60b   :  { %2548 = vmatpush3.bf16.msra.mxu1 %v2683_v39 }
 0x60c   :  { %2561 = vmatprep.subr.bf16.mxu1 %v2766_v1 }
 0x60e   :  { %2550 = vmatmul.mubr.msk.bf16.vlgmr.msra.gmra.mrb[32].mxu1 %vm89_vm1, %v2892_v7 }
 0x60f   :  { %2563 = vmatprep.mubr.msk.bf16.mxu1 %vm2767_vm0, %v2766_v1 }
 0x6cf   :  { %v856_v19 = vpop.f32.mrb[24].mxu0 }
 0x6d0   :  { %v2517_v23 = vpop.f32.mrb[25].mxu0 }
 0x6d1   :  { %v859_v24 = vpop.f32.mrb[26].mxu0  ;;  %v902_v40 = vpop.f32.mrb[24].mxu1 }
 0x6d2   :  { %v908_v42 = vpack.c.bf16 %v902_v40, %v856_v19  ;;  %v2518_v43 = vpop.f32.mrb[27].mxu0  ;;  %v2523_v45 = vpop.f32.mrb[25].mxu1 }
 0x6d3   :  { %v905_v47 = vpop.f32.mrb[26].mxu1 }
 0x6d4   :  { %v2524_v48 = vpop.f32.mrb[27].mxu1  ;;  %2528 = vmatmul.mubr.msk.bf16.vlgmr.msra.gmra.mrb[28].mxu0 %vm282_vm2, %v908_v42 }
 0x6d5   :  { %2538 = vmatpush3.bf16.msra.mxu0 %v2684_v41  ;;  %2541 = vmatprep.mubr.msk.bf16.mxu0 %vm2767_vm0, %v2766_v1 }
 0x6d6   :  { %2539 = vmatprep.subr.bf16.mxu0 %v2766_v1 }
 0x6d9   :  { %v998_v50 = vpop.f32.mrb[28].mxu1  ;;  %2540 = vmatpush3.bf16.msra.mxu0 %v2685_v49 }
 0x6da   :  { %v2535_v52 = vpop.f32.mrb[29].mxu1  ;;  %2553 = vmatprep.subr.bf16.mxu0 %v2766_v1 }
 0x6db   :  { %v1001_v53 = vpop.f32.mrb[30].mxu1 }
 0x6dc   :  { %v2536_v54 = vpop.f32.mrb[31].mxu1  ;;  %2542 = vmatmul.mubr.msk.bf16.vlgmr.msra.gmra.mrb[32].mxu0 %vm89_vm1, %v2892_v7 }
 0x6dd   :  { %2554 = vmatpush3.bf16.msra.mxu0 %v2686_v51  ;;  %2557 = vmatprep.mubr.msk.bf16.mxu0 %vm2767_vm0, %v2766_v1 }
 0x6de   :  { %2555 = vmatprep.subr.bf16.mxu0 %v2766_v1 }
 0x6e1   :  { %2556 = vmatpush3.bf16.msra.mxu0 %v2687_v55  ;;  %v1132_v57 = vpop.f32.mrb[32].mxu1 }
 0x6e2   :  { %2567 = vmatprep.subr.bf16.mxu0 %v2766_v1  ;;  %v1133_v58 = vadd.f32 %v2278_v56, %v1132_v57  ;;  %v2551_v59 = vpop.f32.mrb[33].mxu1 }
 0x6e3   :  { %v1135_v60 = vpop.f32.mrb[34].mxu1 }
 0x6e4   :  { %2558 = vmatmul.mubr.msk.bf16.vlgmr.msra.gmra.mrb[36].mxu0 %vm89_vm1, %v2892_v7  ;;  %v1207_v61 = vpack.c.bf16 %v1133_v58, %v1133_v58  ;;  %v1136_v62 = vadd.f32 %v2278_v56, %v1135_v60  ;;  %v2552_v63 = vpop.f32.mrb[35].mxu1  ;;  %v2295_v60 = vld [vmem:[%s3307_s8 + $0x8] sm:$0xf] }
 0x6e5   :  { %2569 = vmatprep.mubr.msk.bf16.mxu0 %vm2767_vm0, %v2766_v1 }
 0x6e6   :  { %v1215_v0 = vsel %vm282_vm2, %v1207_v61, 0  ;;  %v1208_v2 = vpack.c.bf16 %v1136_v62, %v1136_v62 }
 0x6e7   :  { %2562 = vmatpush3.bf16.xpose.msra.mxu1 %v1215_v0 }
 0x6e8   :  { %v1261_v3 = vsel %vm282_vm2, %v1208_v2, 0  ;;  %2573 = vmatprep.subr.bf16.mxu1 %v2766_v1  ;;  %v1426_v2 = vsel %vm402_vm3, %v2295_v60, 0 }
 0x6ea   :  { %2568 = vmatpush3.bf16.xpose.msra.mxu0 %v1261_v3 }
 0x6eb   :  { %2579 = vmatprep.subr.bf16.mxu0 %v2766_v1 }
 0x7a7   :  { %v951_v4 = vpop.f32.mrb[28].mxu0 }
 0x7a8   :  { %v3100_v5 = vadd.f32 %v998_v50, %v951_v4  ;;  %v2529_v6 = vpop.f32.mrb[29].mxu0  ;;  %v2689_v4 = vld [vmem:[%s3324_s0 + $0x30] sm:$0xff]  }
 0x7a9   :  { %v954_v8 = vpop.f32.mrb[30].mxu0  ;;  %v2691_v6 = vld [vmem:[%s3324_s0 + $0x38] sm:$0xff]  }
 0x7aa   :  { %v3102_v9 = vadd.f32 %v1001_v53, %v954_v8  ;;  %v2530_v10 = vpop.f32.mrb[31].mxu0 }
 0x7af   :  { %v1064_v12 = vpop.f32.mrb[32].mxu0 }
 0x7b0   :  { %v1065_v13 = vadd.f32 %v2269_v11, %v1064_v12  ;;  %v2543_v14 = vpop.f32.mrb[33].mxu0 }
 0x7b1   :  { %v1067_v15 = vpop.f32.mrb[34].mxu0 }
 0x7b2   :  { %v1071_v16 = vmul.f32 0.35355338, %v1065_v13  ;;  %v1068_v17 = vadd.f32 %v2269_v11, %v1067_v15  ;;  %v2544_v18 = vpop.f32.mrb[35].mxu0  ;;  %v2688_v13 = vld [vmem:[%s3303_s4 + $0x30] sm:$0xff]  }
 0x7b4   :  { %v1205_v20 = vpack.c.bf16 %v1071_v16, %v1071_v16  ;;  %v1072_v21 = vmul.f32 0.35355338, %v1068_v17 }
 0x7b6   :  { %v1206_v25 = vpack.c.bf16 %v1072_v21, %v1072_v21  ;;  %2564 = vmatmul.mubr.msk.bf16.vlgmr.msra.gmra.mrb[36].mxu1 %vm282_vm2, %v1205_v20  ;;  %v2690_v20 = vld [vmem:[%s3303_s4 + $0x38] sm:$0xff]   ;;  %v2692_v21 = vld [vmem:[%s3305_s6 + $0x30] sm:$0xff]  }
 0x7b7   :  { %v1198_v26 = vpop.f32.mrb[36].mxu0  ;;  %2575 = vmatprep.mubr.msk.bf16.mxu1 %vm2767_vm0, %v2766_v1 }
 0x7b8   :  { %2570 = vmatmul.mubr.msk.bf16.vlgmr.msra.gmra.mrb[40].mxu0 %vm282_vm2, %v1206_v25  ;;  %v1199_v27 = vadd.f32 %v2287_v22, %v1198_v26  ;;  %v2559_v28 = vpop.f32.mrb[37].mxu0 }
 0x7b9   :  { %v1201_v29 = vpop.f32.mrb[38].mxu0  ;;  %2581 = vmatprep.mubr.msk.bf16.mxu0 %vm2767_vm0, %v2766_v1 }
 0x7ba   :  { %v1209_v30 = vpack.c.bf16 %v1199_v27, %v1199_v27  ;;  %v1202_v31 = vadd.f32 %v2287_v22, %v1201_v29  ;;  %v2560_v32 = vpop.f32.mrb[39].mxu0  ;;  %v2693_v22 = vld [vmem:[%s3305_s6 + $0x38] sm:$0xff]  }
 0x7bc   :  { %v1331_v33 = vsel %vm402_vm3, %v1209_v30, 0  ;;  %v1210_v34 = vpack.c.bf16 %v1202_v31, %v1202_v31 }
 0x7bd   :  { %2574 = vmatpush3.bf16.msra.mxu1 %v1331_v33 }
 0x7be   :  { %v1377_v35 = vsel %vm402_vm3, %v1210_v34, 0  ;;  %2585 = vmatprep.subr.bf16.mxu1 %v2766_v1 }
 0x7bf   :  { %2580 = vmatpush3.bf16.msra.mxu0 %v1377_v35  ;;  %v2302_v35 = vld [vmem:[%s3302_s3 + $0x3] ss:$0 sm:$0xff] }
 0x7c0   :  { %2591 = vmatprep.subr.bf16.mxu0 %v2766_v1 }
 0x889   :  { %v1251_v36 = vpop.f32.mrb[36].mxu1 }
 0x88a   :  { %v1252_v37 = vadd.f32 %v2947_v46, %v1251_v36  ;;  %v2565_v38 = vpop.f32.mrb[37].mxu1 }
 0x88b   :  { %v1254_v39 = vpop.f32.mrb[38].mxu1  ;;  %v1297_v19 = vpop.f32.mrb[40].mxu0 }
 0x88c   :  { %v1298_v23 = vadd.f32 %v2942_v44, %v1297_v19  ;;  %v2566_v24 = vpop.f32.mrb[39].mxu1  ;;  %v2571_v40 = vpop.f32.mrb[41].mxu0  ;;  %v1303_v41 = vsel %vm282_vm2, %v1252_v37, -inf }
 0x88d   :  { %1304 = vmax.xlane.f32.xlu0 %v1303_v41  ;;  %v1300_v42 = vpop.f32.mrb[42].mxu0 }
 0x88e   :  { %v2572_v43 = vpop.f32.mrb[43].mxu0  ;;  %v1306_v45 = vsel %vm282_vm2, %v1298_v23, -inf }
 0x88f   :  { %1307 = vmax.xlane.f32.xlu1 %v1306_v45 }
 0x91a   :  { %v1305_v47 = vpop.xlane.xlu0 %1304 }
 0x91b   :  { %v1309_v48 = vsub.f32 %v1252_v37, %v1305_v47 }
 0x91c   :  { %v1308_v49 = vpop.xlane.xlu1 %1307 }
 0x91d   :  { %v1311_v50 = vmul.f32 1.442695, %v1309_v48  ;;  %v1310_v51 = vsub.f32 %v1298_v23, %v1308_v49  ;;  %v2320_v49 = vld [vmem:[%s3306_s7 + $0x3] ss:$0 sm:$0xff] }
 0x91f   :  { %2716 = vpow2.f32 %v1311_v50  ;;  %v1313_v52 = vmul.f32 1.442695, %v1310_v51 }
 0x921   :  { %2718 = vpow2.f32 %v1313_v52 }
 0x929   :  { %v2717_v53 = vpop.eup %2716 }
 0x92a   :  { %v1315_v54 = vsel %vm282_vm2, %v2717_v53, 0.0 }
 0x92b   :  { %v2719_v55 = vpop.eup %2718  ;;  %1316 = vadd.xlane.f32.xlu0 %v1315_v54 }
 0x92c   :  { %v1318_v56 = vsel %vm282_vm2, %v2719_v55, 0.0 }
 0x92d   :  { %1319 = vadd.xlane.f32.xlu1 %v1318_v56 }
 0x9b8   :  { %v1317_v57 = vpop.xlane.xlu0 %1316 }
 0x9b9   :  { %2720 = vrcp.f32 %v1317_v57 }
 0x9ba   :  { %v1320_v58 = vpop.xlane.xlu1 %1319 }
 0x9bb   :  { %2722 = vrcp.f32 %v1320_v58 }
 0x9c3   :  { %v2721_v59 = vpop.eup %2720 }
 0x9c4   :  { %v1323_v61 = vmul.f32 %v2721_v59, %v2717_v53 }
 0x9c5   :  { %v2723_v62 = vpop.eup %2722 }
 0x9c6   :  { %v1324_v63 = vmul.f32 %v2723_v62, %v2719_v55  ;;  %v1325_v0 = vpack.c.bf16 %v1323_v61, %v1323_v61 }
 0x9c8   :  { %2576 = vmatmul.mubr.msk.bf16.vlgmr.msra.gmra.mrb[40].mxu1 %vm282_vm2, %v1325_v0  ;;  %v1326_v3 = vpack.c.bf16 %v1324_v63, %v1324_v63 }
 0x9c9   :  { %2586 = vmatpush3.bf16.msra.mxu1 %v1426_v2  ;;  %2587 = vmatprep.mubr.msk.bf16.mxu1 %vm2767_vm0, %v2766_v1 }
 0x9ca   :  { %2582 = vmatmul.mubr.msk.bf16.vlgmr.msra.gmra.mrb[44].mxu0 %vm282_vm2, %v1326_v3  ;;  %2599 = vmatprep.subr.bf16.mxu1 %v2766_v1 }
 0x9cb   :  { %2595 = vmatprep.mubr.msk.bf16.mxu0 %vm2767_vm0, %v2766_v1  ;;  %2592 = vmatpush3.bf16.msra.mxu0 %v2689_v4 }
 0x9cc   :  { %2593 = vmatprep.subr.bf16.mxu0 %v2766_v1 }
 0x9cf   :  { %2594 = vmatpush3.bf16.msra.mxu0 %v2691_v6 }
 0x9d0   :  { %2607 = vmatprep.subr.bf16.mxu0 %v2766_v1 }
 0x9d2   :  { %2596 = vmatmul.mubr.msk.bf16.vlgmr.msra.gmra.mrb[48].mxu0 %vm89_vm1, %v2892_v7 }
 0x9d3   :  { %2611 = vmatprep.mubr.msk.bf16.mxu0 %vm2767_vm0, %v2766_v1  ;;  %2608 = vmatpush3.bf16.msra.mxu0 %v2692_v21 }
 0x9d4   :  { %2609 = vmatprep.subr.bf16.mxu0 %v2766_v1 }
 0x9d7   :  { %2610 = vmatpush3.bf16.msra.mxu0 %v2693_v22 }
 0x9d8   :  { %2621 = vmatprep.subr.bf16.mxu0 %v2766_v1 }
 0x9da   :  { %2612 = vmatmul.mubr.msk.bf16.vlgmr.msra.gmra.mrb[52].mxu0 %vm89_vm1, %v2892_v7 }
 0x9db   :  { %2623 = vmatprep.mubr.msk.bf16.mxu0 %vm2767_vm0, %v2766_v1 }
 0xa9b   :  { %v1367_v8 = vpop.f32.mrb[40].mxu1 }
 0xa9c   :  { %v2577_v10 = vpop.f32.mrb[41].mxu1 }
 0xa9d   :  { %v1370_v11 = vpop.f32.mrb[42].mxu1  ;;  %v1413_v12 = vpop.f32.mrb[44].mxu0 }
 0xa9e   :  { %v1419_v14 = vpack.c.bf16 %v1413_v12, %v1367_v8  ;;  %v2578_v15 = vpop.f32.mrb[43].mxu1  ;;  %v2583_v16 = vpop.f32.mrb[45].mxu0 }
 0xa9f   :  { %v1416_v17 = vpop.f32.mrb[46].mxu0 }
 0xaa0   :  { %v2584_v18 = vpop.f32.mrb[47].mxu0  ;;  %2588 = vmatmul.mubr.msk.bf16.vlgmr.msra.gmra.mrb[44].mxu1 %vm282_vm2, %v1419_v14 }
 0xaa1   :  { %2600 = vmatpush3.bf16.msra.mxu1 %v2688_v13  ;;  %2603 = vmatprep.mubr.msk.bf16.mxu1 %vm2767_vm0, %v2766_v1 }
 0xaa2   :  { %2601 = vmatprep.subr.bf16.mxu1 %v2766_v1 }
 0xaa5   :  { %2602 = vmatpush3.bf16.msra.mxu1 %v2690_v20  ;;  %v1530_v25 = vpop.f32.mrb[48].mxu0 }
 0xaa6   :  { %2615 = vmatprep.subr.bf16.mxu1 %v2766_v1  ;;  %v2597_v26 = vpop.f32.mrb[49].mxu0  ;;  %v1531_v39 = vadd.f32 %v2302_v35, %v1530_v25 }
 0xaa7   :  { %v1533_v27 = vpop.f32.mrb[50].mxu0  ;;  %v2328_v26 = vld [vmem:[%s3307_s8 + $0xc] sm:$0xf] }
 0xaa8   :  { %2604 = vmatmul.mubr.msk.bf16.vlgmr.msra.gmra.mrb[48].mxu1 %vm89_vm1, %v2892_v7  ;;  %v2598_v28 = vpop.f32.mrb[51].mxu0  ;;  %v2311_v7 = vld [vmem:[%s3304_s5 + $0x3] ss:$0 sm:$0xff]  ;;  %v1537_v41 = vmul.f32 0.35355338, %v1531_v39  ;;  %v1534_v42 = vadd.f32 %v2302_v35, %v1533_v27 }
 0xaa9   :  { %2617 = vmatprep.mubr.msk.bf16.mxu1 %vm2767_vm0, %v2766_v1 }
 0xaaa   :  { %v1671_v45 = vpack.c.bf16 %v1537_v41, %v1537_v41  ;;  %v1538_v47 = vmul.f32 0.35355338, %v1534_v42 }
 0xaac   :  { %v1672_v48 = vpack.c.bf16 %v1538_v47, %v1538_v47 }
 0xaad   :  { %v1664_v50 = vpop.f32.mrb[52].mxu0 }
 0xaae   :  { %v1665_v51 = vadd.f32 %v2320_v49, %v1664_v50  ;;  %v2613_v52 = vpop.f32.mrb[53].mxu0 }
 0xaaf   :  { %v1667_v53 = vpop.f32.mrb[54].mxu0  ;;  %v2741_v52 = vld [vmem:[%s3325_s23 + $0x8] sm:$0xff] }
 0xab0   :  { %v1675_v54 = vpack.c.bf16 %v1665_v51, %v1665_v51  ;;  %v1668_v55 = vadd.f32 %v2320_v49, %v1667_v53  ;;  %v2614_v56 = vpop.f32.mrb[55].mxu0  ;;  %v2740_v49 = vld [vmem:[%s3325_s23] sm:$0xff] }
 0xab2   :  { %v1797_v57 = vsel %vm402_vm3, %v1675_v54, 0  ;;  %v1676_v58 = vpack.c.bf16 %v1668_v55, %v1668_v55 }
 0xab4   :  { %v1843_v59 = vsel %vm402_vm3, %v1676_v58, 0 }
 0xb73   :  { %v1462_v29 = vpop.f32.mrb[44].mxu1 }
 0xb74   :  { %v3177_v30 = vadd.f32 %v1462_v29, %v3100_v5  ;;  %v2589_v31 = vpop.f32.mrb[45].mxu1 }
 0xb75   :  { %v1465_v32 = vpop.f32.mrb[46].mxu1 }
 0xb76   :  { %v3180_v33 = vadd.f32 %v1465_v32, %v3102_v9  ;;  %v2590_v34 = vpop.f32.mrb[47].mxu1  ;;  %v1892_v32 = vsel %vm402_vm3, %v2328_v26, 0  ;;  %v2699_v26 = vld [vmem:[%s3313_s14 + $0x18] sm:$0xff]  }
 0xb7b   :  { %v1598_v36 = vpop.f32.mrb[48].mxu1 }
 0xb7c   :  { %v1599_v37 = vadd.f32 %v2311_v7, %v1598_v36  ;;  %v2605_v38 = vpop.f32.mrb[49].mxu1 }
 0xb7d   :  { %v1601_v5 = vpop.f32.mrb[50].mxu1 }
 0xb7e   :  { %v1673_v19 = vpack.c.bf16 %v1599_v37, %v1599_v37  ;;  %v1602_v23 = vadd.f32 %v2311_v7, %v1601_v5  ;;  %v2606_v24 = vpop.f32.mrb[51].mxu1 }
 0xb80   :  { %v1681_v9 = vsel %vm282_vm2, %v1673_v19, 0  ;;  %v1674_v40 = vpack.c.bf16 %v1602_v23, %v1602_v23 }
 0xb81   :  { %2616 = vmatpush3.bf16.xpose.msra.mxu1 %v1681_v9  ;;  %v2330_v9 = vld [vmem:[%s3308_s9] ss:$0 sm:$0xff] }
 0xb82   :  { %v1727_v43 = vsel %vm282_vm2, %v1674_v40, 0  ;;  %2627 = vmatprep.subr.bf16.mxu1 %v2766_v1 }
 0xb83   :  { %2622 = vmatpush3.bf16.xpose.msra.mxu0 %v1727_v43 }
 0xb84   :  { %2633 = vmatprep.subr.bf16.mxu0 %v2766_v1 }
 0xb88   :  { %2618 = vmatmul.mubr.msk.bf16.vlgmr.msra.gmra.mrb[52].mxu1 %vm282_vm2, %v1671_v45 }
 0xb89   :  { %2629 = vmatprep.mubr.msk.bf16.mxu1 %vm2767_vm0, %v2766_v1  ;;  %2628 = vmatpush3.bf16.msra.mxu1 %v1797_v57 }
 0xb8a   :  { %2624 = vmatmul.mubr.msk.bf16.vlgmr.msra.gmra.mrb[56].mxu0 %vm282_vm2, %v1672_v48  ;;  %2639 = vmatprep.subr.bf16.mxu1 %v2766_v1 }
 0xb8b   :  { %2635 = vmatprep.mubr.msk.bf16.mxu0 %vm2767_vm0, %v2766_v1  ;;  %2634 = vmatpush3.bf16.msra.mxu0 %v1843_v59 }
 0xb8c   :  { %2645 = vmatprep.subr.bf16.mxu0 %v2766_v1 }
 0xc5b   :  { %v1717_v60 = vpop.f32.mrb[52].mxu1 }
 0xc5c   :  { %v1718_v61 = vadd.f32 %v2947_v46, %v1717_v60  ;;  %v2619_v62 = vpop.f32.mrb[53].mxu1 }
 0xc5d   :  { %v1720_v63 = vpop.f32.mrb[54].mxu1  ;;  %v1763_v0 = vpop.f32.mrb[56].mxu0 }
 0xc5e   :  { %v1764_v2 = vadd.f32 %v2942_v44, %v1763_v0  ;;  %v2620_v3 = vpop.f32.mrb[55].mxu1  ;;  %v2625_v4 = vpop.f32.mrb[57].mxu0  ;;  %v1769_v6 = vsel %vm282_vm2, %v1718_v61, -inf  ;;  %v2694_v63 = vld [vmem:[%s3311_s12] sm:$0xff]   ;;  %v2695_v0 = vld [vmem:[%s3311_s12 + $0x8] sm:$0xff]  }
 0xc5f   :  { %1770 = vmax.xlane.f32.xlu0 %v1769_v6  ;;  %v1766_v8 = vpop.f32.mrb[58].mxu0  ;;  %v2697_v3 = vld [vmem:[%s3313_s14 + $0x8] sm:$0xff]  }
 0xc60   :  { %v2626_v10 = vpop.f32.mrb[59].mxu0  ;;  %v1772_v11 = vsel %vm282_vm2, %v1764_v2, -inf }
 0xc61   :  { %1773 = vmax.xlane.f32.xlu1 %v1772_v11 }
 0xcec   :  { %v1771_v12 = vpop.xlane.xlu0 %1770 }
 0xced   :  { %v1775_v13 = vsub.f32 %v1718_v61, %v1771_v12 }
 0xcee   :  { %v1774_v14 = vpop.xlane.xlu1 %1773 }
 0xcef   :  { %v1777_v15 = vmul.f32 1.442695, %v1775_v13  ;;  %v1776_v46 = vsub.f32 %v1764_v2, %v1774_v14  ;;  %v2696_v2 = vld [vmem:[%s3313_s14] sm:$0xff]  }
 0xcf0   :  { %v2331_v14 = vld [vmem:[%s3309_s10] ss:$0 sm:$0xff] }
 0xcf1   :  { %2724 = vpow2.f32 %v1777_v15  ;;  %v1779_v16 = vmul.f32 1.442695, %v1776_v46 }
 0xcf3   :  { %2726 = vpow2.f32 %v1779_v16 }
 0xcfb   :  { %v2725_v17 = vpop.eup %2724 }
 0xcfc   :  { %v1781_v44 = vsel %vm282_vm2, %v2725_v17, 0.0 }
 0xcfd   :  { %v2727_v18 = vpop.eup %2726  ;;  %1782 = vadd.xlane.f32.xlu0 %v1781_v44  ;;  %v2332_v44 = vld [vmem:[%s3310_s11] ss:$0 sm:$0xff] }
 0xcfe   :  { %v1784_v20 = vsel %vm282_vm2, %v2727_v18, 0.0 }
 0xcff   :  { %1785 = vadd.xlane.f32.xlu1 %v1784_v20 }
 0xd8a   :  { %v1783_v21 = vpop.xlane.xlu0 %1782 }
 0xd8b   :  { %2728 = vrcp.f32 %v1783_v21 }
 0xd8c   :  { %v1786_v22 = vpop.xlane.xlu1 %1785 }
 0xd8d   :  { %2730 = vrcp.f32 %v1786_v22 }
 0xd95   :  { %v2729_v25 = vpop.eup %2728 }
 0xd96   :  { %v1789_v27 = vmul.f32 %v2729_v25, %v2725_v17  ;;  %v2698_v25 = vld [vmem:[%s3313_s14 + $0x10] sm:$0xff]  }
 0xd97   :  { %v2731_v28 = vpop.eup %2730 }
 0xd98   :  { %v1790_v29 = vmul.f32 %v2731_v28, %v2727_v18  ;;  %v1791_v31 = vpack.c.bf16 %v1789_v27, %v1789_v27  ;;  %v2333_v27 = vld [vmem:[%s3312_s13] ss:$0 sm:$0xff] }
 0xd9a   :  { %2630 = vmatmul.mubr.msk.bf16.vlgmr.msra.gmra.mrb[56].mxu1 %vm282_vm2, %v1791_v31  ;;  %v1792_v34 = vpack.c.bf16 %v1790_v29, %v1790_v29 }
 0xd9b   :  { %2640 = vmatpush3.bf16.msra.mxu1 %v1892_v32  ;;  %2641 = vmatprep.mubr.msk.bf16.mxu1 %vm2767_vm0, %v2766_v1 }
 0xd9c   :  { %2636 = vmatmul.mubr.msk.bf16.vlgmr.msra.gmra.mrb[60].mxu0 %vm282_vm2, %v1792_v34  ;;  %2653 = vmatprep.subr.bf16.mxu1 %v2766_v1 }
 0xd9d   :  { %2649 = vmatprep.mubr.msk.bf16.mxu0 %vm2767_vm0, %v2766_v1  ;;  %2646 = vmatpush3.bf16.msra.mxu0 %v2694_v63  ;;  %v2344_v63 = vld [vmem:[%s3316_s17] ss:$0 sm:$0xff] }
 0xd9e   :  { %2647 = vmatprep.subr.bf16.mxu0 %v2766_v1 }
 0xda1   :  { %2648 = vmatpush3.bf16.msra.mxu0 %v2695_v0 }
 0xe6d   :  { %v1833_v7 = vpop.f32.mrb[56].mxu1 }
 0xe6e   :  { %v2631_v35 = vpop.f32.mrb[57].mxu1 }
 0xe6f   :  { %v1836_v36 = vpop.f32.mrb[58].mxu1  ;;  %v1879_v37 = vpop.f32.mrb[60].mxu0 }
 0xe70   :  { %v1885_v38 = vpack.c.bf16 %v1879_v37, %v1833_v7  ;;  %v2632_v39 = vpop.f32.mrb[59].mxu1  ;;  %v2637_v5 = vpop.f32.mrb[61].mxu0 }
 0xe71   :  { %v1882_v19 = vpop.f32.mrb[62].mxu0 }
 0xe72   :  { %v2638_v23 = vpop.f32.mrb[63].mxu0  ;;  %2642 = vmatmul.mubr.msk.bf16.vlgmr.msra.gmra.mrb[60].mxu1 %vm282_vm2, %v1885_v38 }
 0xe73   :  { %2661 = vmatprep.mubr.msk.bf16.mxu1 %vm2767_vm0, %v2766_v1  ;;  %2654 = vmatpush3.bf16.msra.mxu1 %v2696_v2 }
 0xe74   :  { %2655 = vmatprep.subr.bf16.mxu1 %v2766_v1 }
 0xe77   :  { %2656 = vmatpush3.bf16.msra.mxu1 %v2697_v3 }
 0xe78   :  { %2657 = vmatprep.subr.bf16.mxu1 %v2766_v1 }
 0xe7b   :  { %2658 = vmatpush3.bf16.msra.mxu1 %v2698_v25 }
 0xe7c   :  { %2659 = vmatprep.subr.bf16.mxu1 %v2766_v1  ;;  %v2337_v1 = vld [vmem:[%s3314_s15] ss:$0 sm:$0xff] }
 0xe7f   :  { %2660 = vmatpush3.bf16.msra.mxu1 %v2699_v26 }
 0xf45   :  { %v1928_v24 = vpop.f32.mrb[60].mxu1 }
 0xf46   :  { %v1935_v40 = vadd.f32 %v1928_v24, %v3177_v30  ;;  %v2643_v41 = vpop.f32.mrb[61].mxu1 }
 0xf47   :  { %v1931_v42 = vpop.f32.mrb[62].mxu1 }
 0xf48   :  { %v1944_v43 = vadd.f32 %v2330_v9, %v1935_v40  ;;  %v1936_v45 = vadd.f32 %v1931_v42, %v3180_v33  ;;  %v2644_v47 = vpop.f32.mrb[63].mxu1 }
 0xf4a   :  { %v1945_v48 = vadd.f32 %v2330_v9, %v1936_v45  ;;  %v1946_v50 = vadd.f32 %v2740_v49, %v1944_v43 }
 0xf4c   :  { %v1950_v51 = vsel %vm89_vm1, %v1946_v50, 0.0  ;;  %v1947_v53 = vadd.f32 %v2741_v52, %v1945_v48 }
 0xf4d   :  { %1951 = vadd.xlane.f32.xlu0 %v1950_v51 }
 0xf4e   :  { %v1953_v30 = vsel %vm89_vm1, %v1947_v53, 0.0 }
 0xf4f   :  { %1954 = vadd.xlane.f32.xlu1 %v1953_v30 }
 0xfda   :  { %v1952_v54 = vpop.xlane.xlu0 %1951 }
 0xfdb   :  { %v1957_v33 = vmul.f32 0.03125, %v1952_v54 }
 0xfdc   :  { %v1955_v55 = vpop.xlane.xlu1 %1954 }
 0xfdd   :  { %v1959_v56 = vsub.f32 %v1946_v50, %v1957_v33  ;;  %v1958_v57 = vmul.f32 0.03125, %v1955_v55 }
 0xfdf   :  { %v1960_v58 = vsub.f32 %v1947_v53, %v1958_v57  ;;  %v1961_v59 = vmul.f32 %v1959_v56, %v1959_v56 }
 0xfe1   :  { %v1963_v60 = vsel %vm89_vm1, %v1961_v59, 0.0  ;;  %v1962_v61 = vmul.f32 %v1960_v58, %v1960_v58 }
 0xfe2   :  { %1964 = vadd.xlane.f32.xlu0 %v1963_v60  ;;  %v2343_v60 = vld [vmem:[%s3315_s16] ss:$0 sm:$0xff] }
 0xfe3   :  { %v1966_v62 = vsel %vm89_vm1, %v1962_v61, 0.0 }
 0xfe4   :  { %1967 = vadd.xlane.f32.xlu1 %v1966_v62 }
0x106f   :  { %v1965_v4 = vpop.xlane.xlu0 %1964 }
0x1070   :  { %v1969_v6 = vmul.f32 0.03125, %v1965_v4 }
0x1071   :  { %v1968_v8 = vpop.xlane.xlu1 %1967 }
0x1072   :  { %v1971_v10 = vadd.f32 1e-12, %v1969_v6  ;;  %v1970_v11 = vmul.f32 0.03125, %v1968_v8 }
0x1074   :  { %2732 = vrsqrt.f32 %v1971_v10  ;;  %v1972_v12 = vadd.f32 1e-12, %v1970_v11 }
0x1076   :  { %2734 = vrsqrt.f32 %v1972_v12 }
0x107e   :  { %v2733_v13 = vpop.eup %2732 }
0x107f   :  { %v1975_v15 = vmul.f32 %v2733_v13, %v1959_v56 }
0x1080   :  { %v2735_v46 = vpop.eup %2734 }
0x1081   :  { %v1983_v16 = vmul.f32 %v2331_v14, %v1975_v15  ;;  %v1976_v17 = vmul.f32 %v2735_v46, %v1960_v58 }
0x1083   :  { %v1984_v18 = vmul.f32 %v2331_v14, %v1976_v17  ;;  %v1991_v20 = vadd.f32 %v2332_v44, %v1983_v16 }
0x1085   :  { %v1992_v21 = vadd.f32 %v2332_v44, %v1984_v18 }
0x1087   :  { %v1993_v22 = vpack.c.bf16 %v1992_v21, %v1991_v20 }
0x1089   :  { %2650 = vmatmul.mubr.msk.bf16.vlgmr.msra.gmra.mrb[64].mxu0 %vm89_vm1, %v1993_v22 }
0x115c   :  { %v2054_v28 = vpop.f32.mrb[64].mxu0 }
0x115d   :  { %v2055_v29 = vadd.f32 %v2333_v27, %v2054_v28  ;;  %v2651_v31 = vpop.f32.mrb[65].mxu0 }
0x115e   :  { %v2057_v32 = vpop.f32.mrb[66].mxu0 }
0x115f   :  { %v2058_v34 = vadd.f32 %v2333_v27, %v2057_v32  ;;  %v2652_v7 = vpop.f32.mrb[67].mxu0  ;;  %v2061_v35 = vmax.f32 %v2055_v29, 0.0 }
0x1161   :  { %v2062_v36 = vmax.f32 %v2058_v34, 0.0 }
0x1163   :  { %v2063_v37 = vpack.c.bf16 %v2062_v36, %v2061_v35 }
0x1165   :  { %2662 = vmatmul.mubr.msk.bf16.vlgmr.msra.gmra.mrb[64].mxu1 %vm2103_vm4, %v2063_v37 }
0x1238   :  { %v2141_v38 = vpop.f32.mrb[64].mxu1 }
0x1239   :  { %v2142_v39 = vadd.f32 %v2337_v1, %v2141_v38  ;;  %v2663_v5 = vpop.f32.mrb[65].mxu1 }
0x123a   :  { %v2144_v19 = vpop.f32.mrb[66].mxu1 }
0x123b   :  { %v2145_v23 = vadd.f32 %v2337_v1, %v2144_v19  ;;  %v2664_v24 = vpop.f32.mrb[67].mxu1  ;;  %v2148_v9 = vadd.f32 %v2142_v39, %v1991_v20 }
0x123d   :  { %v2152_v40 = vsel %vm89_vm1, %v2148_v9, 0.0  ;;  %v2149_v41 = vadd.f32 %v2145_v23, %v1992_v21 }
0x123e   :  { %2153 = vadd.xlane.f32.xlu0 %v2152_v40 }
0x123f   :  { %v2155_v42 = vsel %vm89_vm1, %v2149_v41, 0.0 }
0x1240   :  { %2156 = vadd.xlane.f32.xlu1 %v2155_v42 }
0x12cb   :  { %v2154_v43 = vpop.xlane.xlu0 %2153 }
0x12cc   :  { %v2158_v45 = vmul.f32 0.03125, %v2154_v43 }
0x12cd   :  { %v2157_v47 = vpop.xlane.xlu1 %2156 }
0x12ce   :  { %v2160_v48 = vsub.f32 %v2148_v9, %v2158_v45  ;;  %v2159_v49 = vmul.f32 0.03125, %v2157_v47 }
0x12d0   :  { %v2161_v50 = vsub.f32 %v2149_v41, %v2159_v49  ;;  %v2162_v51 = vmul.f32 %v2160_v48, %v2160_v48 }
0x12d2   :  { %v2164_v52 = vsel %vm89_vm1, %v2162_v51, 0.0  ;;  %v2163_v53 = vmul.f32 %v2161_v50, %v2161_v50 }
0x12d3   :  { %2165 = vadd.xlane.f32.xlu0 %v2164_v52 }
0x12d4   :  { %v2167_v30 = vsel %vm89_vm1, %v2163_v53, 0.0 }
0x12d5   :  { %2168 = vadd.xlane.f32.xlu1 %v2167_v30 }
0x1360   :  { %v2166_v54 = vpop.xlane.xlu0 %2165 }
0x1361   :  { %v2170_v33 = vmul.f32 0.03125, %v2166_v54 }
0x1362   :  { %v2169_v55 = vpop.xlane.xlu1 %2168 }
0x1363   :  { %v2172_v56 = vadd.f32 1e-12, %v2170_v33  ;;  %v2171_v57 = vmul.f32 0.03125, %v2169_v55 }
0x1365   :  { %2736 = vrsqrt.f32 %v2172_v56  ;;  %v2173_v58 = vadd.f32 1e-12, %v2171_v57 }
0x1367   :  { %2738 = vrsqrt.f32 %v2173_v58 }
0x136f   :  { %v2737_v59 = vpop.eup %2736 }
0x1370   :  { %v2176_v61 = vmul.f32 %v2737_v59, %v2160_v48 }
0x1371   :  { %v2739_v62 = vpop.eup %2738 }
0x1372   :  { %v2177_v0 = vmul.f32 %v2739_v62, %v2161_v50  ;;  %v2184_v2 = vmul.f32 %v2343_v60, %v2176_v61 }
0x1374   :  { %v2185_v3 = vmul.f32 %v2343_v60, %v2177_v0  ;;  %v2192_v4 = vadd.f32 %v2344_v63, %v2184_v2 }
0x1376   :  { %v2193_v6 = vadd.f32 %v2344_v63, %v2185_v3  ;;  %2194 = vst.msk [vmem:[#allocation2] sm:$0xff] %vm89_vm1, %v2192_v4 }
0x1378   :  { %2195 = vst.msk [vmem:[#allocation2 + $0x8] sm:$0xff] %vm89_vm1, %v2193_v6 }
0x1379   :  { %2753 = shalt.err (!%p2750_p4)
}
0x137a   :  { %s2754_s2 = scalar_lea.hbm %s3317_s18, 256 }
0x137b   :  { %p2755_p5 = scmp.ne.s32.totalorder %s3317_s18, %s2754_s2  ;;  %p2758_p6 = scmp.lt.u32.totalorder %s2754_s2, %s3317_s18 }
0x137d   :  { %p2760_p7 = pnand %p2758_p6, %p2755_p5 }
0x137f   :  { %2763 = shalt.err (!%p2760_p7)
}
0x1380   :  { %s2769_s25 = smov 128   ;;  %s2770_s26 = smov 8  }
0x1381   :  { %2207 = dma.vmem_to_hbm [thread:$0]  %s2202_s21, 256, %s3317_s18, [#allocation3], %s2769_s25, %s2769_s25, %s2770_s26  }
0x1382   :  { %2764 = dma.done.wait [#allocation3], 256  }
0x1383   :  { %2765 = vsyncadd [#allocation3], 4294967040 }
0x1384   :  { %2211 = vsyncpa [#allocation3], 1 }

</bundles_post_ra>
